<compile_context>
chip_gen: v7x
topology: tpu7x:2x2x1
jax: 0.10.0
libtpu: 0.0.40
codegen_flags: <defaults>
</compile_context>

<pallas_src>
import functools

import jax
import jax.numpy as jnp
from jax import lax
from jax.experimental import pallas as pl
from jax.experimental.pallas import tpu as pltpu


def _round_up(x, m):
    return (x + m - 1) // m * m


def _convrnn_fused_kernel(x_ref, w_ref, b_ref, o_ref, acc_ref, *, H, W, K):
    """Fused 3x3 conv for one image tile.

    x_ref  : (1, H+2, W+2, Cin)  bf16  spatially pre-padded NHWC input tile
    w_ref  : (K*K, Cin, Coutp)   bf16  tap-major folded conv weight (resident)
    b_ref  : (1, Coutp)          f32   bias row (resident)
    o_ref  : (H*W, Coutp)        out   lane-dense output tile
    acc_ref: (H*W, Coutp)        f32   VMEM accumulator scratch
    """
    Cin = x_ref.shape[-1]
    acc_ref[...] = jnp.zeros_like(acc_ref)
    # 9 shifted taps -> 9 aligned MXU pushes accumulating in f32.
    for kh in range(K):
        for kw in range(K):
            tap = x_ref[0, kh:kh + H, kw:kw + W, :].reshape(H * W, Cin)
            acc_ref[...] += jnp.dot(
                tap, w_ref[kh * K + kw], preferred_element_type=jnp.float32)
    o_ref[...] = (acc_ref[...] + b_ref[...]).astype(o_ref.dtype)


def pack_conv_params(weight_oihw, bias, *, lane=128):
    """One-time (loop-invariant) weight/bias repack for the kernel.

    weight_oihw: (Cout, Cin, K, K) f32 -> (K*K, Cin, Coutp) bf16, tap-major.
    bias: (Cout,) f32 -> (1, Coutp) f32.
    """
    Cout, Cin, K, _ = weight_oihw.shape
    cout_p = _round_up(Cout, lane)
    w = jnp.transpose(weight_oihw, (2, 3, 1, 0)).reshape(K * K, Cin, Cout)
    w = jnp.pad(w.astype(jnp.bfloat16), ((0, 0), (0, 0), (0, cout_p - Cout)))
    b = jnp.pad(bias.astype(jnp.float32), (0, cout_p - Cout)).reshape(1, cout_p)
    return w, b


def _conv3x3_pallas(combined_padded, w_packed, b_row, *, out_dtype=jnp.float32):
    """combined_padded: (N, H+2, W+2, Cin) bf16 -> (N*H*W, Coutp) out_dtype."""
    N, Hp, Wp, Cin = combined_padded.shape
    H, W = Hp - 2, Wp - 2
    KK, Cin_w, cout_p = w_packed.shape
    assert Cin_w == Cin and KK == 9
    K = 3
    assert (H * W) % 8 == 0, "flattened spatial rows must be a multiple of 8"

    flops = 2 * N * H * W * K * K * Cin * cout_p
    bytes_accessed = (combined_padded.size * 2 + w_packed.size * 2
                      + b_row.size * 4
                      + N * H * W * cout_p * jnp.dtype(out_dtype).itemsize)

    return pl.pallas_call(
        functools.partial(_convrnn_fused_kernel, H=H, W=W, K=K),
        out_shape=jax.ShapeDtypeStruct((N * H * W, cout_p), out_dtype),
        grid=(N,),
        in_specs=[
            pl.BlockSpec((1, Hp, Wp, Cin), lambda n: (n, 0, 0, 0)),
            pl.BlockSpec((KK, Cin, cout_p), lambda n: (0, 0, 0)),
            pl.BlockSpec((1, cout_p), lambda n: (0, 0)),
        ],
        out_specs=pl.BlockSpec((H * W, cout_p), lambda n: (n, 0)),
        scratch_shapes=[pltpu.VMEM((H * W, cout_p), jnp.float32)],
        compiler_params=pltpu.CompilerParams(
            dimension_semantics=("parallel",)),
        cost_estimate=pl.CostEstimate(
            flops=flops, transcendentals=0, bytes_accessed=bytes_accessed),
    )(combined_padded, w_packed, b_row)


def conv_rnn_forward(x_nchw, h_nchw, w_packed, b_row, *, cout):
    """PyTorch-semantics forward: returns new hidden state, NCHW f32.

    x_nchw: (N, Cx, H, W), h_nchw: (N, Ch, H, W)
    w_packed/b_row: from pack_conv_params (done once, hoisted out of the step).
    """
    N, Cx, H, W = x_nchw.shape
    Ch = h_nchw.shape[1]
    pad = 1  # matches nn.Conv2d(..., padding=1)

    # Glue kept in plain JAX (single cheap pass over the small-Cin activation):
    # NCHW->NHWC, channel concat, bf16 cast, spatial zero halo.
    x_nhwc = jnp.transpose(x_nchw, (0, 2, 3, 1))
    h_nhwc = jnp.transpose(h_nchw, (0, 2, 3, 1))
    combined = jnp.concatenate([x_nhwc, h_nhwc], axis=-1).astype(jnp.bfloat16)
    combined = jnp.pad(combined, ((0, 0), (pad, pad), (pad, pad), (0, 0)))

    out_flat = _conv3x3_pallas(combined, w_packed, b_row,
                               out_dtype=jnp.float32)
    out = out_flat.reshape(N, H, W, -1)[..., :cout]
    return jnp.transpose(out, (0, 3, 1, 2))


if __name__ == "__main__":
    # Small shapes consistent with the module's forward.
    batch = 2
    input_channels = 4
    hidden_channels = 8
    kernel_size = 3
    spatial = 16

    key = jax.random.PRNGKey(0)
    kx, khid, kwt, kb = jax.random.split(key, 4)

    x = jax.random.normal(kx, (batch, input_channels, spatial, spatial),
                          jnp.float32)
    h = jax.random.normal(khid, (batch, hidden_channels, spatial, spatial),
                          jnp.float32)

    # Deterministic parameter init (PyTorch-default-style uniform bounds).
    cin_total = input_channels + hidden_channels
    fan_in = cin_total * kernel_size * kernel_size
    bound = 1.0 / float(fan_in) ** 0.5
    weight = jax.random.uniform(
        kwt, (hidden_channels, cin_total, kernel_size, kernel_size),
        jnp.float32, -bound, bound)
    bias = jax.random.uniform(kb, (hidden_channels,), jnp.float32, -bound, bound)

    # Weight repack hoisted out of the per-step function (loop-invariant).
    w_packed, b_row = pack_conv_params(weight, bias)

    fwd = jax.jit(conv_rnn_forward, static_argnames=("cout",))
    out = fwd(x, h, w_packed, b_row, cout=hidden_channels)
    out = jax.block_until_ready(out)

    # Correctness check. The kernel computes in bf16 with f32 accumulation, so
    # compare against the same conv on bf16-rounded operands (f32 accumulate).
    combined = jnp.concatenate([x, h], axis=1)
    combined_b = combined.astype(jnp.bfloat16).astype(jnp.float32)
    weight_b = weight.astype(jnp.bfloat16).astype(jnp.float32)
    ref = lax.conv_general_dilated(
        combined_b, weight_b, window_strides=(1, 1),
        padding=((1, 1), (1, 1)),
        dimension_numbers=("NCHW", "OIHW", "NCHW"),
        precision=lax.Precision.HIGHEST,
    ) + bias.reshape(1, -1, 1, 1)

    assert out.shape == (batch, hidden_channels, spatial, spatial)
    assert jnp.allclose(out, ref, atol=2e-3, rtol=2e-3), "mismatch vs reference conv"
    print("KERNEL_OK")
</pallas_src>

<mosaic_0001>
module attributes {stable_mosaic.version = 11 : i64} {
  func.func @_convrnn_fused_kernel(%arg0: i32, %arg1: memref<1x18x18x12xbf16, #tpu.memory_space<vmem>>, %arg2: memref<9x12x128xbf16, #tpu.memory_space<vmem>>, %arg3: memref<1x128xf32, #tpu.memory_space<vmem>>, %arg4: memref<256x128xf32, #tpu.memory_space<vmem>>, %arg5: memref<256x128xf32, #tpu.memory_space<vmem>>) attributes {dimension_semantics = [#tpu.dimension_semantics<parallel>], iteration_bounds = array<i64: 2>, scalar_prefetch = 0 : i64, scratch_operands = 1 : i64, tpu.core_type = #tpu.core_type<tc>, window_params = [{transform_indices = @transform_0, window_bounds = array<i64: 1, 18, 18, 12>}, {pipeline_mode = #tpu.pipeline_mode<synchronous>, transform_indices = @transform_1, window_bounds = array<i64: 9, 12, 128>}, {pipeline_mode = #tpu.pipeline_mode<synchronous>, transform_indices = @transform_2, window_bounds = array<i64: 1, 128>}, {transform_indices = @transform_3, window_bounds = array<i64: 256, 128>}]} {
    %cst = arith.constant 0.000000e+00 : f32
    %0 = vector.broadcast %cst : f32 to vector<256x128xf32>
    %c0 = arith.constant 0 : index
    %c0_0 = arith.constant 0 : index
    %1 = vector.load %arg5[%c0, %c0_0] : memref<256x128xf32, #tpu.memory_space<vmem>>, vector<256x128xf32>
    tpu.vector_store %arg5[%c0, %c0_0], %0 {strides = array<i32>} : memref<256x128xf32, #tpu.memory_space<vmem>>, vector<256x128xf32>,
    %c0_1 = arith.constant 0 : index
    %c0_2 = arith.constant 0 : index
    %c0_3 = arith.constant 0 : index
    %c0_4 = arith.constant 0 : index
    %2 = vector.load %arg1[%c0_1, %c0_2, %c0_3, %c0_4] : memref<1x18x18x12xbf16, #tpu.memory_space<vmem>>, vector<1x16x16x12xbf16>
    %3 = vector.shape_cast %2 : vector<1x16x16x12xbf16> to vector<16x16x12xbf16>
    %4 = vector.shape_cast %3 : vector<16x16x12xbf16> to vector<256x12xbf16>
    %c0_5 = arith.constant 0 : index
    %c0_6 = arith.constant 0 : index
    %5 = vector.load %arg5[%c0_5, %c0_6] : memref<256x128xf32, #tpu.memory_space<vmem>>, vector<256x128xf32>
    %c0_7 = arith.constant 0 : index
    %c0_8 = arith.constant 0 : index
    %c0_9 = arith.constant 0 : index
    %6 = vector.load %arg2[%c0_7, %c0_8, %c0_9] : memref<9x12x128xbf16, #tpu.memory_space<vmem>>, vector<1x12x128xbf16>
    %7 = vector.shape_cast %6 : vector<1x12x128xbf16> to vector<12x128xbf16>
    %cst_10 = arith.constant dense<0.000000e+00> : vector<256x128xf32>
    %8 = tpu.matmul %4, %7, %cst_10 {dimension_numbers = #tpu.dot_dimension_numbers<[1], [0], [0], [1], [0, 0, 1, 1], [], []>} : vector<256x12xbf16>, vector<12x128xbf16>, vector<256x128xf32> -> vector<256x128xf32>
    %9 = arith.addf %5, %8 : vector<256x128xf32>
    %c0_11 = arith.constant 0 : index
    %c0_12 = arith.constant 0 : index
    %10 = vector.load %arg5[%c0_11, %c0_12] : memref<256x128xf32, #tpu.memory_space<vmem>>, vector<256x128xf32>
    tpu.vector_store %arg5[%c0_11, %c0_12], %9 {strides = array<i32>} : memref<256x128xf32, #tpu.memory_space<vmem>>, vector<256x128xf32>,
    %c0_13 = arith.constant 0 : index
    %c0_14 = arith.constant 0 : index
    %c1 = arith.constant 1 : index
    %c0_15 = arith.constant 0 : index
    %11 = vector.load %arg1[%c0_13, %c0_14, %c1, %c0_15] : memref<1x18x18x12xbf16, #tpu.memory_space<vmem>>, vector<1x16x16x12xbf16>
    %12 = vector.shape_cast %11 : vector<1x16x16x12xbf16> to vector<16x16x12xbf16>
    %13 = vector.shape_cast %12 : vector<16x16x12xbf16> to vector<256x12xbf16>
    %c0_16 = arith.constant 0 : index
    %c0_17 = arith.constant 0 : index
    %14 = vector.load %arg5[%c0_16, %c0_17] : memref<256x128xf32, #tpu.memory_space<vmem>>, vector<256x128xf32>
    %c1_18 = arith.constant 1 : index
    %c0_19 = arith.constant 0 : index
    %c0_20 = arith.constant 0 : index
    %15 = vector.load %arg2[%c1_18, %c0_19, %c0_20] : memref<9x12x128xbf16, #tpu.memory_space<vmem>>, vector<1x12x128xbf16>
    %16 = vector.shape_cast %15 : vector<1x12x128xbf16> to vector<12x128xbf16>
    %cst_21 = arith.constant dense<0.000000e+00> : vector<256x128xf32>
    %17 = tpu.matmul %13, %16, %cst_21 {dimension_numbers = #tpu.dot_dimension_numbers<[1], [0], [0], [1], [0, 0, 1, 1], [], []>} : vector<256x12xbf16>, vector<12x128xbf16>, vector<256x128xf32> -> vector<256x128xf32>
    %18 = arith.addf %14, %17 : vector<256x128xf32>
    %c0_22 = arith.constant 0 : index
    %c0_23 = arith.constant 0 : index
    %19 = vector.load %arg5[%c0_22, %c0_23] : memref<256x128xf32, #tpu.memory_space<vmem>>, vector<256x128xf32>
    tpu.vector_store %arg5[%c0_22, %c0_23], %18 {strides = array<i32>} : memref<256x128xf32, #tpu.memory_space<vmem>>, vector<256x128xf32>,
    %c0_24 = arith.constant 0 : index
    %c0_25 = arith.constant 0 : index
    %c2 = arith.constant 2 : index
    %c0_26 = arith.constant 0 : index
    %20 = vector.load %arg1[%c0_24, %c0_25, %c2, %c0_26] : memref<1x18x18x12xbf16, #tpu.memory_space<vmem>>, vector<1x16x16x12xbf16>
    %21 = vector.shape_cast %20 : vector<1x16x16x12xbf16> to vector<16x16x12xbf16>
    %22 = vector.shape_cast %21 : vector<16x16x12xbf16> to vector<256x12xbf16>
    %c0_27 = arith.constant 0 : index
    %c0_28 = arith.constant 0 : index
    %23 = vector.load %arg5[%c0_27, %c0_28] : memref<256x128xf32, #tpu.memory_space<vmem>>, vector<256x128xf32>
    %c2_29 = arith.constant 2 : index
    %c0_30 = arith.constant 0 : index
    %c0_31 = arith.constant 0 : index
    %24 = vector.load %arg2[%c2_29, %c0_30, %c0_31] : memref<9x12x128xbf16, #tpu.memory_space<vmem>>, vector<1x12x128xbf16>
    %25 = vector.shape_cast %24 : vector<1x12x128xbf16> to vector<12x128xbf16>
    %cst_32 = arith.constant dense<0.000000e+00> : vector<256x128xf32>
    %26 = tpu.matmul %22, %25, %cst_32 {dimension_numbers = #tpu.dot_dimension_numbers<[1], [0], [0], [1], [0, 0, 1, 1], [], []>} : vector<256x12xbf16>, vector<12x128xbf16>, vector<256x128xf32> -> vector<256x128xf32>
    %27 = arith.addf %23, %26 : vector<256x128xf32>
    %c0_33 = arith.constant 0 : index
    %c0_34 = arith.constant 0 : index
    %28 = vector.load %arg5[%c0_33, %c0_34] : memref<256x128xf32, #tpu.memory_space<vmem>>, vector<256x128xf32>
    tpu.vector_store %arg5[%c0_33, %c0_34], %27 {strides = array<i32>} : memref<256x128xf32, #tpu.memory_space<vmem>>, vector<256x128xf32>,
    %c0_35 = arith.constant 0 : index
    %c1_36 = arith.constant 1 : index
    %c0_37 = arith.constant 0 : index
    %c0_38 = arith.constant 0 : index
    %29 = vector.load %arg1[%c0_35, %c1_36, %c0_37, %c0_38] : memref<1x18x18x12xbf16, #tpu.memory_space<vmem>>, vector<1x16x16x12xbf16>
    %30 = vector.shape_cast %29 : vector<1x16x16x12xbf16> to vector<16x16x12xbf16>
    %31 = vector.shape_cast %30 : vector<16x16x12xbf16> to vector<256x12xbf16>
    %c0_39 = arith.constant 0 : index
    %c0_40 = arith.constant 0 : index
    %32 = vector.load %arg5[%c0_39, %c0_40] : memref<256x128xf32, #tpu.memory_space<vmem>>, vector<256x128xf32>
    %c3 = arith.constant 3 : index
    %c0_41 = arith.constant 0 : index
    %c0_42 = arith.constant 0 : index
    %33 = vector.load %arg2[%c3, %c0_41, %c0_42] : memref<9x12x128xbf16, #tpu.memory_space<vmem>>, vector<1x12x128xbf16>
    %34 = vector.shape_cast %33 : vector<1x12x128xbf16> to vector<12x128xbf16>
    %cst_43 = arith.constant dense<0.000000e+00> : vector<256x128xf32>
    %35 = tpu.matmul %31, %34, %cst_43 {dimension_numbers = #tpu.dot_dimension_numbers<[1], [0], [0], [1], [0, 0, 1, 1], [], []>} : vector<256x12xbf16>, vector<12x128xbf16>, vector<256x128xf32> -> vector<256x128xf32>
    %36 = arith.addf %32, %35 : vector<256x128xf32>
    %c0_44 = arith.constant 0 : index
    %c0_45 = arith.constant 0 : index
    %37 = vector.load %arg5[%c0_44, %c0_45] : memref<256x128xf32, #tpu.memory_space<vmem>>, vector<256x128xf32>
    tpu.vector_store %arg5[%c0_44, %c0_45], %36 {strides = array<i32>} : memref<256x128xf32, #tpu.memory_space<vmem>>, vector<256x128xf32>,
    %c0_46 = arith.constant 0 : index
    %c1_47 = arith.constant 1 : index
    %c1_48 = arith.constant 1 : index
    %c0_49 = arith.constant 0 : index
    %38 = vector.load %arg1[%c0_46, %c1_47, %c1_48, %c0_49] : memref<1x18x18x12xbf16, #tpu.memory_space<vmem>>, vector<1x16x16x12xbf16>
    %39 = vector.shape_cast %38 : vector<1x16x16x12xbf16> to vector<16x16x12xbf16>
    %40 = vector.shape_cast %39 : vector<16x16x12xbf16> to vector<256x12xbf16>
    %c0_50 = arith.constant 0 : index
    %c0_51 = arith.constant 0 : index
    %41 = vector.load %arg5[%c0_50, %c0_51] : memref<256x128xf32, #tpu.memory_space<vmem>>, vector<256x128xf32>
    %c4 = arith.constant 4 : index
    %c0_52 = arith.constant 0 : index
    %c0_53 = arith.constant 0 : index
    %42 = vector.load %arg2[%c4, %c0_52, %c0_53] : memref<9x12x128xbf16, #tpu.memory_space<vmem>>, vector<1x12x128xbf16>
    %43 = vector.shape_cast %42 : vector<1x12x128xbf16> to vector<12x128xbf16>
    %cst_54 = arith.constant dense<0.000000e+00> : vector<256x128xf32>
    %44 = tpu.matmul %40, %43, %cst_54 {dimension_numbers = #tpu.dot_dimension_numbers<[1], [0], [0], [1], [0, 0, 1, 1], [], []>} : vector<256x12xbf16>, vector<12x128xbf16>, vector<256x128xf32> -> vector<256x128xf32>
    %45 = arith.addf %41, %44 : vector<256x128xf32>
    %c0_55 = arith.constant 0 : index
    %c0_56 = arith.constant 0 : index
    %46 = vector.load %arg5[%c0_55, %c0_56] : memref<256x128xf32, #tpu.memory_space<vmem>>, vector<256x128xf32>
    tpu.vector_store %arg5[%c0_55, %c0_56], %45 {strides = array<i32>} : memref<256x128xf32, #tpu.memory_space<vmem>>, vector<256x128xf32>,
    %c0_57 = arith.constant 0 : index
    %c1_58 = arith.constant 1 : index
    %c2_59 = arith.constant 2 : index
    %c0_60 = arith.constant 0 : index
    %47 = vector.load %arg1[%c0_57, %c1_58, %c2_59, %c0_60] : memref<1x18x18x12xbf16, #tpu.memory_space<vmem>>, vector<1x16x16x12xbf16>
    %48 = vector.shape_cast %47 : vector<1x16x16x12xbf16> to vector<16x16x12xbf16>
    %49 = vector.shape_cast %48 : vector<16x16x12xbf16> to vector<256x12xbf16>
    %c0_61 = arith.constant 0 : index
    %c0_62 = arith.constant 0 : index
    %50 = vector.load %arg5[%c0_61, %c0_62] : memref<256x128xf32, #tpu.memory_space<vmem>>, vector<256x128xf32>
    %c5 = arith.constant 5 : index
    %c0_63 = arith.constant 0 : index
    %c0_64 = arith.constant 0 : index
    %51 = vector.load %arg2[%c5, %c0_63, %c0_64] : memref<9x12x128xbf16, #tpu.memory_space<vmem>>, vector<1x12x128xbf16>
    %52 = vector.shape_cast %51 : vector<1x12x128xbf16> to vector<12x128xbf16>
    %cst_65 = arith.constant dense<0.000000e+00> : vector<256x128xf32>
    %53 = tpu.matmul %49, %52, %cst_65 {dimension_numbers = #tpu.dot_dimension_numbers<[1], [0], [0], [1], [0, 0, 1, 1], [], []>} : vector<256x12xbf16>, vector<12x128xbf16>, vector<256x128xf32> -> vector<256x128xf32>
    %54 = arith.addf %50, %53 : vector<256x128xf32>
    %c0_66 = arith.constant 0 : index
    %c0_67 = arith.constant 0 : index
    %55 = vector.load %arg5[%c0_66, %c0_67] : memref<256x128xf32, #tpu.memory_space<vmem>>, vector<256x128xf32>
    tpu.vector_store %arg5[%c0_66, %c0_67], %54 {strides = array<i32>} : memref<256x128xf32, #tpu.memory_space<vmem>>, vector<256x128xf32>,
    %c0_68 = arith.constant 0 : index
    %c2_69 = arith.constant 2 : index
    %c0_70 = arith.constant 0 : index
    %c0_71 = arith.constant 0 : index
    %56 = vector.load %arg1[%c0_68, %c2_69, %c0_70, %c0_71] : memref<1x18x18x12xbf16, #tpu.memory_space<vmem>>, vector<1x16x16x12xbf16>
    %57 = vector.shape_cast %56 : vector<1x16x16x12xbf16> to vector<16x16x12xbf16>
    %58 = vector.shape_cast %57 : vector<16x16x12xbf16> to vector<256x12xbf16>
    %c0_72 = arith.constant 0 : index
    %c0_73 = arith.constant 0 : index
    %59 = vector.load %arg5[%c0_72, %c0_73] : memref<256x128xf32, #tpu.memory_space<vmem>>, vector<256x128xf32>
    %c6 = arith.constant 6 : index
    %c0_74 = arith.constant 0 : index
    %c0_75 = arith.constant 0 : index
    %60 = vector.load %arg2[%c6, %c0_74, %c0_75] : memref<9x12x128xbf16, #tpu.memory_space<vmem>>, vector<1x12x128xbf16>
    %61 = vector.shape_cast %60 : vector<1x12x128xbf16> to vector<12x128xbf16>
    %cst_76 = arith.constant dense<0.000000e+00> : vector<256x128xf32>
    %62 = tpu.matmul %58, %61, %cst_76 {dimension_numbers = #tpu.dot_dimension_numbers<[1], [0], [0], [1], [0, 0, 1, 1], [], []>} : vector<256x12xbf16>, vector<12x128xbf16>, vector<256x128xf32> -> vector<256x128xf32>
    %63 = arith.addf %59, %62 : vector<256x128xf32>
    %c0_77 = arith.constant 0 : index
    %c0_78 = arith.constant 0 : index
    %64 = vector.load %arg5[%c0_77, %c0_78] : memref<256x128xf32, #tpu.memory_space<vmem>>, vector<256x128xf32>
    tpu.vector_store %arg5[%c0_77, %c0_78], %63 {strides = array<i32>} : memref<256x128xf32, #tpu.memory_space<vmem>>, vector<256x128xf32>,
    %c0_79 = arith.constant 0 : index
    %c2_80 = arith.constant 2 : index
    %c1_81 = arith.constant 1 : index
    %c0_82 = arith.constant 0 : index
    %65 = vector.load %arg1[%c0_79, %c2_80, %c1_81, %c0_82] : memref<1x18x18x12xbf16, #tpu.memory_space<vmem>>, vector<1x16x16x12xbf16>
    %66 = vector.shape_cast %65 : vector<1x16x16x12xbf16> to vector<16x16x12xbf16>
    %67 = vector.shape_cast %66 : vector<16x16x12xbf16> to vector<256x12xbf16>
    %c0_83 = arith.constant 0 : index
    %c0_84 = arith.constant 0 : index
    %68 = vector.load %arg5[%c0_83, %c0_84] : memref<256x128xf32, #tpu.memory_space<vmem>>, vector<256x128xf32>
    %c7 = arith.constant 7 : index
    %c0_85 = arith.constant 0 : index
    %c0_86 = arith.constant 0 : index
    %69 = vector.load %arg2[%c7, %c0_85, %c0_86] : memref<9x12x128xbf16, #tpu.memory_space<vmem>>, vector<1x12x128xbf16>
    %70 = vector.shape_cast %69 : vector<1x12x128xbf16> to vector<12x128xbf16>
    %cst_87 = arith.constant dense<0.000000e+00> : vector<256x128xf32>
    %71 = tpu.matmul %67, %70, %cst_87 {dimension_numbers = #tpu.dot_dimension_numbers<[1], [0], [0], [1], [0, 0, 1, 1], [], []>} : vector<256x12xbf16>, vector<12x128xbf16>, vector<256x128xf32> -> vector<256x128xf32>
    %72 = arith.addf %68, %71 : vector<256x128xf32>
    %c0_88 = arith.constant 0 : index
    %c0_89 = arith.constant 0 : index
    %73 = vector.load %arg5[%c0_88, %c0_89] : memref<256x128xf32, #tpu.memory_space<vmem>>, vector<256x128xf32>
    tpu.vector_store %arg5[%c0_88, %c0_89], %72 {strides = array<i32>} : memref<256x128xf32, #tpu.memory_space<vmem>>, vector<256x128xf32>,
    %c0_90 = arith.constant 0 : index
    %c2_91 = arith.constant 2 : index
    %c2_92 = arith.constant 2 : index
    %c0_93 = arith.constant 0 : index
    %74 = vector.load %arg1[%c0_90, %c2_91, %c2_92, %c0_93] : memref<1x18x18x12xbf16, #tpu.memory_space<vmem>>, vector<1x16x16x12xbf16>
    %75 = vector.shape_cast %74 : vector<1x16x16x12xbf16> to vector<16x16x12xbf16>
    %76 = vector.shape_cast %75 : vector<16x16x12xbf16> to vector<256x12xbf16>
    %c0_94 = arith.constant 0 : index
    %c0_95 = arith.constant 0 : index
    %77 = vector.load %arg5[%c0_94, %c0_95] : memref<256x128xf32, #tpu.memory_space<vmem>>, vector<256x128xf32>
    %c8 = arith.constant 8 : index
    %c0_96 = arith.constant 0 : index
    %c0_97 = arith.constant 0 : index
    %78 = vector.load %arg2[%c8, %c0_96, %c0_97] : memref<9x12x128xbf16, #tpu.memory_space<vmem>>, vector<1x12x128xbf16>
    %79 = vector.shape_cast %78 : vector<1x12x128xbf16> to vector<12x128xbf16>
    %cst_98 = arith.constant dense<0.000000e+00> : vector<256x128xf32>
    %80 = tpu.matmul %76, %79, %cst_98 {dimension_numbers = #tpu.dot_dimension_numbers<[1], [0], [0], [1], [0, 0, 1, 1], [], []>} : vector<256x12xbf16>, vector<12x128xbf16>, vector<256x128xf32> -> vector<256x128xf32>
    %81 = arith.addf %77, %80 : vector<256x128xf32>
    %c0_99 = arith.constant 0 : index
    %c0_100 = arith.constant 0 : index
    %82 = vector.load %arg5[%c0_99, %c0_100] : memref<256x128xf32, #tpu.memory_space<vmem>>, vector<256x128xf32>
    tpu.vector_store %arg5[%c0_99, %c0_100], %81 {strides = array<i32>} : memref<256x128xf32, #tpu.memory_space<vmem>>, vector<256x128xf32>,
    %c0_101 = arith.constant 0 : index
    %c0_102 = arith.constant 0 : index
    %83 = vector.load %arg5[%c0_101, %c0_102] : memref<256x128xf32, #tpu.memory_space<vmem>>, vector<256x128xf32>
    %c0_103 = arith.constant 0 : index
    %c0_104 = arith.constant 0 : index
    %84 = vector.load %arg3[%c0_103, %c0_104] : memref<1x128xf32, #tpu.memory_space<vmem>>, vector<1x128xf32>
    %85 = vector.broadcast %84 : vector<1x128xf32> to vector<256x128xf32>
    %86 = arith.addf %83, %85 : vector<256x128xf32>
    %c0_105 = arith.constant 0 : index
    %c0_106 = arith.constant 0 : index
    %87 = vector.load %arg4[%c0_105, %c0_106] : memref<256x128xf32, #tpu.memory_space<vmem>>, vector<256x128xf32>
    tpu.vector_store %arg4[%c0_105, %c0_106], %86 {strides = array<i32>} : memref<256x128xf32, #tpu.memory_space<vmem>>, vector<256x128xf32>,
    return
  }
  func.func @transform_0(%arg0: i32) -> (i32, i32, i32, i32) {
    %c0_i32 = arith.constant 0 : i32
    %c0_i32_0 = arith.constant 0 : i32
    %c0_i32_1 = arith.constant 0 : i32
    %c0_i32_2 = arith.constant 0 : i32
    return %arg0, %c0_i32, %c0_i32_0, %c0_i32_1 : i32, i32, i32, i32
  }
  func.func @transform_1(%arg0: i32) -> (i32, i32, i32) {
    %c0_i32 = arith.constant 0 : i32
    %c0_i32_0 = arith.constant 0 : i32
    %c0_i32_1 = arith.constant 0 : i32
    %c0_i32_2 = arith.constant 0 : i32
    return %c0_i32, %c0_i32_0, %c0_i32_1 : i32, i32, i32
  }
  func.func @transform_2(%arg0: i32) -> (i32, i32) {
    %c0_i32 = arith.constant 0 : i32
    %c0_i32_0 = arith.constant 0 : i32
    %c0_i32_1 = arith.constant 0 : i32
    return %c0_i32, %c0_i32_0 : i32, i32
  }
  func.func @transform_3(%arg0: i32) -> (i32, i32) {
    %c0_i32 = arith.constant 0 : i32
    %c0_i32_0 = arith.constant 0 : i32
    return %arg0, %c0_i32 : i32, i32
  }
}

</mosaic_0001>

<bundles_post_ra>
// kernel: conv_rnn_forward.1
= control target key start
LH: loop header
LB: loop body
LE: loop exit
PB: predicated region body
PF: predicated region fallthrough
CT: control target
= control target key end

     0   :  { %s7211_s12 = smov 0   ;;  %s8508_s0 = inlined_call_operand.vmem [shape: bf16[2,18,18,12], index: 0, kind: input, shape index: {}]   ;;  %s8509_s1 = inlined_call_operand.vmem [shape: bf16[9,12,128], index: 1, kind: input, shape index: {}]   ;;  %s8510_s2 = inlined_call_operand.vmem [shape: f32[1,128], index: 2, kind: input, shape index: {}]   ;;  %s8511_s3 = inlined_call_operand.vmem [shape: f32[512,128], index: 3, kind: output, shape index: {}]  }
   0x1 LB: > { %s7217_s13 = sadd.s32 4294967295, %s7189_s12   ;;  %p5765_p0 = scmp.ge.s32.totalorder %s7189_s12, 1  ;;  %s7189_s12 = sphi %s7211_s12, %s13_s12  }
   0x2   : > { %p137_p1 = scmp.lt.s32.totalorder %s7189_s12, 3 }
   0x4   : > { %p138_p2 = pnand %p5765_p0, %p137_p1 }
   0x5   : > { %v7125_v0 = vld [vmem:[%s8509_s1] sm:$0x3f] (!%p138_p2)   ;;  %vm405_vm0 = vcmask (!%p138_p2), 1045504   ;;  %p161_p3 = scmp.lt.s32.totalorder (!%p138_p2), %s7217_s13, 1  ;;  %v7131_v4 = vld [vmem:[%s8509_s1 + $0x8] sm:$0x3f] (!%p138_p2)  }
   0x6   : > { %141 = sbr.rel (%p138_p2) target bundleno = 541 (0x21d), region = 32  ;;  %7106 = vmatprep.subr.msk.bf16.mxu1 (!%p138_p2), %vm405_vm0, %v7125_v0  ;;  %v407_v1 = vsel (!%p138_p2), %vm405_vm0, %v7125_v0, 0  ;;  %v7128_v2 = vld [vmem:[%s8509_s1 + $0x20] sm:$0x3f] (!%p138_p2)   ;;  %vm356_vm1 = vcmask (!%p138_p2), 97280   ;;  %v1206_v9 = vsel (!%p138_p2), %vm405_vm0, %v7131_v4, 0 }
   0x7   : > { %6543 = vmatpush3.bf16.msra.mxu1 (!%p138_p2), %v407_v1  ;;  %7110 = vmatprep.subr.msk.bf16.mxu0 (!%p138_p2), %vm405_vm0, %v7128_v2  ;;  %v7233_v3 = vsel (!%p138_p2), %vm405_vm0, %v7128_v2, 0  ;;  %v7132_v5 = vld [vmem:[%s8509_s1 + $0x28] sm:$0x3f] (!%p138_p2)   ;;  %vm682_vm2 = vsmask.f32 (!%p138_p2), 3328  ;;  %vm1529_vm5 = vcmask (!%p138_p2), 1042432  }
   0x8   : > { %6679 = vmatpush3.bf16.msra.mxu0 (!%p138_p2), %v7233_v3  ;;  %7107 = vmatprep.subr.msk.bf16.mxu1 (!%p138_p2), %vm405_vm0, %v7131_v4  ;;  %vm683_vm3 = vsmask.f32 (!%p138_p2), 7440  ;;  %v7251_v6 = vld [vmem:[%s8509_s1 + $0x30] sm:$0x3f] (!%p138_p2)   ;;  %v7261_v11 = vsel (!%p138_p2), %vm405_vm0, %v7132_v5, 0  ;;  %vm1530_vm6 = vcmask (!%p138_p2), 1046532  }
   0x9   : > { %7112 = vmatprep.subr.msk.bf16.mxu0 (!%p138_p2), %vm405_vm0, %v7132_v5  ;;  %v7265_v12 = vsel (!%p138_p2), %vm405_vm0, %v7251_v6, 0  ;;  %vm7278_vm4 = vmor (!%p138_p2), %vm682_vm2, %vm683_vm3  ;;  %s5767_s14 = sshll.u32 (!%p138_p2), %s7217_s13, 5 }
   0xa   : > { %vm7353_vm7 = vmor (!%p138_p2), %vm1529_vm5, %vm1530_vm6  ;;  %p167_p4 = scmp.lt.s32.totalorder (!%p138_p2), %s5767_s14, 63 }
   0xd   : > { %s162_s18 = scalar_select %p161_p3, %s7217_s13, 1 }
   0xe   : > { %s8517_s14 = smov (!%p167_p4, %s5767_s14), 63 }
   0xf   : > { %s7116_s21 = smul.u32 216, %s162_s18  ;;  %s5768_s15 = sshll.u32 %s8517_s14, 3 }
  0x10   : > { %s8439_s20 = scalar_lea.vmem %s8511_s3, %s5768_s15 }
  0x11   : > { %s7246_s26 = scalar_lea.vmem %s8508_s0, %s7116_s21 }
  0x12   : > { %v7126_v7 = vld [vmem:[%s7246_s26] sm:$0xff]   ;;  %v7127_v8 = vld [vmem:[%s7246_s26 + $0xc] sm:$0xff]   ;;  %v7129_v10 = vld [vmem:[%s7246_s26 + $0x18] sm:$0xff]  }
  0x13   : > { %6544 = vmatprep.mubr.msk.bf16.mxu1 %vm356_vm1, %v7126_v7  ;;  %v5955_v13 = vld [vmem:[%s7246_s26 + $0xc] sm:$0xf]  ;;  %v5956_v14 = vld [vmem:[%s7246_s26 + $0x10] sm:$0xf]  ;;  %v5957_v15 = vld [vmem:[%s7246_s26 + $0x14] sm:$0x1] }
  0x14   : > { %6545 = vmatmul.mubr.msk.bf16.vlgmr.msra.gmra.mrb[0].mxu1 %vm356_vm1, %v7127_v8  ;;  %v7130_v16 = vld [vmem:[%s7246_s26 + $0x24] sm:$0xff]   ;;  %v2486_v17 = vshrl.u32 %v5955_v13, 16  ;;  %v2489_v18 = vshll.u32 %v5955_v13, 16  ;;  %v2495_v19 = vshll.u32 %v5956_v14, 16  ;;  %v2499_v20 = vshrl.u32 %v5956_v14, 16  ;;  %v7133_v38 = vld [vmem:[%s7246_s26 + $0x30] sm:$0xff]  }
  0x15   : > { %6548 = vmatprep.mubr.msk.bf16.mxu1 %vm356_vm1, %v7129_v10  ;;  %6577 = vmatpush3.bf16.msra.mxu1 %v1206_v9  ;;  %v5958_v21 = vld [vmem:[%s7246_s26 + $0x18] sm:$0xf]  ;;  %v2505_v22 = vshll.u32 %v5957_v15, 16  ;;  %v5959_v23 = vld [vmem:[%s7246_s26 + $0x1c] sm:$0xf]  ;;  %v7135_v1 = vld [vmem:[%s7246_s26 + $0x48] sm:$0xff]  }
  0x16   : > { %v5960_v24 = vld [vmem:[%s7246_s26 + $0x20] sm:$0x1]  ;;  %v2510_v25 = vshrl.u32 %v5958_v21, 16  ;;  %v2488_v26 = vrot.slane %v2486_v17, 4  ;;  %v2491_v27 = vrot.slane %v2489_v18, 5  ;;  %v2497_v28 = vrot.slane %v2495_v19, 5 }
  0x17   : > { %v2501_v29 = vrot.slane %v2499_v20, 4  ;;  %v2507_v30 = vrot.slane %v2505_v22, 5  ;;  %v2513_v32 = vshll.u32 %v5958_v21, 16  ;;  %v2519_v33 = vshll.u32 %v5959_v23, 16  ;;  %v5961_v42 = vld [vmem:[%s7246_s26 + $0x24] sm:$0xf] }
  0x18   : > { %v2512_v31 = vrot.slane %v2510_v25, 4  ;;  %v2492_v34 = vor.u32 %v2491_v27, %v2488_v26  ;;  %v2523_v36 = vshrl.u32 %v5959_v23, 16  ;;  %v2529_v37 = vshll.u32 %v5960_v24, 16  ;;  %v5962_v47 = vld [vmem:[%s7246_s26 + $0x28] sm:$0xf]  ;;  %v7134_v56 = vld [vmem:[%s7246_s26 + $0x3c] sm:$0xff]  }
  0x19   : > { %v2502_v35 = vor.u32 %v2501_v29, %v2497_v28  ;;  %v2515_v40 = vrot.slane %v2513_v32, 5  ;;  %v2521_v41 = vrot.slane %v2519_v33, 5  ;;  %v5963_v49 = vld [vmem:[%s7246_s26 + $0x2c] sm:$0x1]  ;;  %v2534_v50 = vshrl.u32 %v5961_v42, 16 }
  0x1a   : > { %v2493_v43 = vrot.slane %v2492_v34, 4  ;;  %v2525_v45 = vrot.slane %v2523_v36, 4  ;;  %v2531_v46 = vrot.slane %v2529_v37, 5  ;;  %v2537_v51 = vshll.u32 %v5961_v42, 16  ;;  %v5964_v58 = vld [vmem:[%s7246_s26 + $0x30] sm:$0xf] }
  0x1b   : > { %v2503_v44 = vrot.slane %v2502_v35, 4  ;;  %v2516_v48 = vor.u32 %v2515_v40, %v2512_v31  ;;  %v2543_v52 = vshll.u32 %v5962_v47, 16  ;;  %v2547_v57 = vshrl.u32 %v5962_v47, 16  ;;  %v5965_v59 = vld [vmem:[%s7246_s26 + $0x34] sm:$0xf] }
  0x1c   : > { %6549 = vmatmul.mubr.msk.bf16.gmra.mrb[4].mxu1 %vm356_vm1, %v7130_v16  ;;  %v2498_v53 = vsel %vm7278_vm4, %v2493_v43, %v2497_v28  ;;  %v2526_v55 = vor.u32 %v2525_v45, %v2521_v41  ;;  %v2536_v62 = vrot.slane %v2534_v50, 4  ;;  %v2539_v63 = vrot.slane %v2537_v51, 5  ;;  %v5966_v0 = vld [vmem:[%s7246_s26 + $0x38] sm:$0x1]  ;;  %v5967_v18 = vld [vmem:[%s7246_s26 + $0x3c] sm:$0xf] }
  0x1d   : > { %6552 = vmatprep.mubr.msk.bf16.mxu1 %vm356_vm1, %v7133_v38  ;;  %v2508_v54 = vsel %vm7278_vm4, %v2503_v44, %v2507_v30  ;;  %v2517_v61 = vrot.slane %v2516_v48, 4  ;;  %v2545_v4 = vrot.slane %v2543_v52, 5  ;;  %v2549_v5 = vrot.slane %v2547_v57, 4  ;;  %v5968_v23 = vld [vmem:[%s7246_s26 + $0x40] sm:$0xf]  ;;  %v7136_v42 = vld [vmem:[%s7246_s26 + $0x54] sm:$0xff]  }
  0x1e   : > { %v6005_v60 = vcombine.low %v2498_v53, %v2508_v54  ;;  %v2527_v2 = vrot.slane %v2526_v55, 4  ;;  %v2553_v7 = vshll.u32 %v5963_v49, 16  ;;  %v2540_v9 = vor.u32 %v2539_v63, %v2536_v62  ;;  %v5969_v30 = vld [vmem:[%s7246_s26 + $0x44] sm:$0x1]  ;;  %v5970_v33 = vld [vmem:[%s7246_s26 + $0x48] sm:$0xf] }
  0x1f   : > { %v2522_v8 = vsel %vm7278_vm4, %v2517_v61, %v2521_v41  ;;  %v2558_v10 = vshrl.u32 %v5964_v58, 16  ;;  %v2561_v13 = vshll.u32 %v5964_v58, 16  ;;  %v2550_v15 = vor.u32 %v2549_v5, %v2545_v4  ;;  %v5971_v38 = vld [vmem:[%s7246_s26 + $0x4c] sm:$0xf]  ;;  %v5972_v45 = vld [vmem:[%s7246_s26 + $0x50] sm:$0x1] }
  0x20   : > { %6680 = vmatprep.mubr.msk.bf16.mxu0 %vm356_vm1, %v6005_v60  ;;  %v2532_v14 = vsel %vm7278_vm4, %v2527_v2, %v2531_v46  ;;  %v2555_v16 = vrot.slane %v2553_v7, 5  ;;  %v2567_v17 = vshll.u32 %v5965_v59, 16  ;;  %v2541_v20 = vrot.slane %v2540_v9, 4  ;;  %v7137_v49 = vld [vmem:[%s7246_s26 + $0x60] sm:$0xff]   ;;  %v5973_v61 = vld [vmem:[%s7246_s26 + $0x54] sm:$0xf] }
  0x21   : > { %v6006_v19 = vcombine.low %v2522_v8, %v2532_v14  ;;  %v2560_v21 = vrot.slane %v2558_v10, 4  ;;  %v2563_v22 = vrot.slane %v2561_v13, 5  ;;  %v2551_v24 = vrot.slane %v2550_v15, 4  ;;  %v5974_v2 = vld [vmem:[%s7246_s26 + $0x58] sm:$0xf] }
  0x22   : > { %v2569_v25 = vrot.slane %v2567_v17, 5  ;;  %v2571_v26 = vshrl.u32 %v5965_v59, 16  ;;  %v2577_v27 = vshll.u32 %v5966_v0, 16  ;;  %v2546_v28 = vsel %vm7278_vm4, %v2541_v20, %v2545_v4  ;;  %v5975_v9 = vld [vmem:[%s7246_s26 + $0x5c] sm:$0x1]  ;;  %v7138_v20 = vld [vmem:[%s7246_s26 + $0x6c] sm:$0xff]  }
  0x23   : > { %6681 = vmatmul.mubr.msk.bf16.vlgmr.msra.gmra.mrb[0].mxu0 %vm356_vm1, %v6006_v19  ;;  %v2564_v29 = vor.u32 %v2563_v22, %v2560_v21  ;;  %v2582_v31 = vshrl.u32 %v5967_v18, 16  ;;  %v2585_v32 = vshll.u32 %v5967_v18, 16  ;;  %v2556_v34 = vsel %vm7278_vm4, %v2551_v24, %v2555_v16  ;;  %v5976_v10 = vld [vmem:[%s7246_s26 + $0x60] sm:$0xf]  ;;  %v5977_v17 = vld [vmem:[%s7246_s26 + $0x64] sm:$0xf] }
  0x24   : > { %6553 = vmatmul.mubr.msk.bf16.gmra.mrb[8].mxu1 %vm356_vm1, %v7134_v56  ;;  %6713 = vmatpush3.bf16.msra.mxu0 %v7261_v11  ;;  %v2573_v35 = vrot.slane %v2571_v26, 4  ;;  %v2579_v36 = vrot.slane %v2577_v27, 5  ;;  %v2591_v37 = vshll.u32 %v5968_v23, 16  ;;  %v6007_v40 = vcombine.low %v2546_v28, %v2556_v34  ;;  %v5978_v27 = vld [vmem:[%s7246_s26 + $0x68] sm:$0x1]  ;;  %v7139_v28 = vld [vmem:[%s7246_s26 + $0x78] sm:$0xff]  }
  0x25   : > { %6556 = vmatprep.mubr.msk.bf16.mxu1 %vm356_vm1, %v7135_v1  ;;  %v2565_v41 = vrot.slane %v2564_v29, 4  ;;  %v2584_v43 = vrot.slane %v2582_v31, 4  ;;  %v2587_v44 = vrot.slane %v2585_v32, 5  ;;  %7113 = vmatprep.subr.msk.bf16.mxu0 %vm405_vm0, %v7251_v6  ;;  %v2595_v11 = vshrl.u32 %v5968_v23, 16 }
  0x26   : > { %v2574_v46 = vor.u32 %v2573_v35, %v2569_v25  ;;  %v2593_v47 = vrot.slane %v2591_v37, 5  ;;  %v2601_v48 = vshll.u32 %v5969_v30, 16  ;;  %6684 = vmatprep.mubr.msk.bf16.mxu0 %vm356_vm1, %v6007_v40  ;;  %v2606_v52 = vshrl.u32 %v5970_v33, 16 }
  0x27   : > { %v2570_v50 = vsel %vm7278_vm4, %v2565_v41, %v2569_v25  ;;  %v2588_v51 = vor.u32 %v2587_v44, %v2584_v43  ;;  %v2609_v53 = vshll.u32 %v5970_v33, 16  ;;  %v2597_v55 = vrot.slane %v2595_v11, 4  ;;  %v6038_v33 = vld [vmem:[%s7246_s26 + $0xc] sm:$0xe]  ;;  %v6040_v44 = vld [vmem:[%s7246_s26 + $0x14] sm:$0x1] }
  0x28   : > { %v2575_v54 = vrot.slane %v2574_v46, 4  ;;  %v2603_v56 = vrot.slane %v2601_v48, 5  ;;  %v2615_v57 = vshll.u32 %v5971_v38, 16  ;;  %v2608_v58 = vrot.slane %v2606_v52, 4  ;;  %v6041_v48 = vld [vmem:[%s7246_s26 + $0x18] sm:$0xe] }
  0x29   : > { %v2589_v6 = vrot.slane %v2588_v51, 4  ;;  %v2611_v59 = vrot.slane %v2609_v53, 5  ;;  %v2619_v60 = vshrl.u32 %v5971_v38, 16  ;;  %v2598_v63 = vor.u32 %v2597_v55, %v2593_v47  ;;  %v6039_v38 = vld [vmem:[%s7246_s26 + $0x10] sm:$0xf] }
  0x2a   : > { %v2580_v62 = vsel %vm7278_vm4, %v2575_v54, %v2579_v36  ;;  %v2617_v0 = vrot.slane %v2615_v57, 5  ;;  %v2625_v1 = vshll.u32 %v5972_v45, 16  ;;  %v2630_v15 = vshrl.u32 %v5973_v61, 16  ;;  %v6043_v55 = vld [vmem:[%s7246_s26 + $0x20] sm:$0x1] }
  0x2b   : > { %v6008_v4 = vcombine.low %v2570_v50, %v2580_v62  ;;  %v2594_v5 = vsel %vm7278_vm4, %v2589_v6, %v2593_v47  ;;  %v2612_v7 = vor.u32 %v2611_v59, %v2608_v58  ;;  %v2621_v8 = vrot.slane %v2619_v60, 4  ;;  %v7140_v6 = vld [vmem:[%s7246_s26 + $0x84] sm:$0xff]  }
  0x2c   : > { %6557 = vmatmul.mubr.msk.bf16.gmra.mrb[12].mxu1 %vm356_vm1, %v7136_v42  ;;  %v2599_v13 = vrot.slane %v2598_v63, 4  ;;  %v2627_v14 = vrot.slane %v2625_v1, 5  ;;  %v2633_v16 = vshll.u32 %v5973_v61, 16  ;;  %v2639_v21 = vshll.u32 %v5974_v2, 16 }
  0x2d   : > { %6560 = vmatprep.mubr.msk.bf16.mxu1 %vm356_vm1, %v7137_v49  ;;  %6685 = vmatmul.mubr.msk.bf16.gmra.mrb[4].mxu0 %vm356_vm1, %v6008_v4  ;;  %v2613_v18 = vrot.slane %v2612_v7, 4  ;;  %v2622_v19 = vor.u32 %v2621_v8, %v2617_v0  ;;  %v2643_v22 = vshrl.u32 %v5974_v2, 16  ;;  %v2632_v24 = vrot.slane %v2630_v15, 4  ;;  %v6042_v49 = vld [vmem:[%s7246_s26 + $0x1c] sm:$0xf] }
  0x2e   : > { %v2604_v23 = vsel %vm7278_vm4, %v2599_v13, %v2603_v56  ;;  %v2635_v25 = vrot.slane %v2633_v16, 5  ;;  %v2649_v26 = vshll.u32 %v5975_v9, 16  ;;  %v2641_v32 = vrot.slane %v2639_v21, 5  ;;  %v7142_v13 = vld [vmem:[%s7246_s26 + $0x90] sm:$0xff]  }
  0x2f   : > { %v6009_v29 = vcombine.low %v2594_v5, %v2604_v23  ;;  %v2618_v30 = vsel %vm7278_vm4, %v2613_v18, %v2617_v0  ;;  %v2623_v31 = vrot.slane %v2622_v19, 4  ;;  %v2645_v35 = vrot.slane %v2643_v22, 4  ;;  %v6044_v5 = vld [vmem:[%s7246_s26 + $0x24] sm:$0xe]  ;;  %v6047_v23 = vld [vmem:[%s7246_s26 + $0x30] sm:$0xe] }
  0x30   : > { %v2636_v34 = vor.u32 %v2635_v25, %v2632_v24  ;;  %v2651_v36 = vrot.slane %v2649_v26, 5  ;;  %v2654_v37 = vshrl.u32 %v5976_v10, 16  ;;  %v2657_v41 = vshll.u32 %v5976_v10, 16  ;;  %v6048_v24 = vld [vmem:[%s7246_s26 + $0x34] sm:$0xf] }
  0x31   : > { %6688 = vmatprep.mubr.msk.bf16.mxu0 %vm356_vm1, %v6009_v29  ;;  %v2628_v40 = vsel %vm7278_vm4, %v2623_v31, %v2627_v14  ;;  %v2663_v42 = vshll.u32 %v5977_v17, 16  ;;  %v2667_v43 = vshrl.u32 %v5977_v17, 16  ;;  %v2646_v47 = vor.u32 %v2645_v35, %v2641_v32  ;;  %v6045_v14 = vld [vmem:[%s7246_s26 + $0x28] sm:$0xf]  ;;  %v6046_v17 = vld [vmem:[%s7246_s26 + $0x2c] sm:$0x1] }
  0x32   : > { %v6010_v45 = vcombine.low %v2618_v30, %v2628_v40  ;;  %v2637_v46 = vrot.slane %v2636_v34, 4  ;;  %v2656_v11 = vrot.slane %v2654_v37, 4  ;;  %v2659_v50 = vrot.slane %v2657_v41, 5  ;;  %v6049_v25 = vld [vmem:[%s7246_s26 + $0x38] sm:$0x1] }
  0x33   : > { %v2665_v51 = vrot.slane %v2663_v42, 5  ;;  %v2669_v52 = vrot.slane %v2667_v43, 4  ;;  %v2673_v53 = vshll.u32 %v5978_v27, 16  ;;  %v2647_v57 = vrot.slane %v2646_v47, 4  ;;  %v6051_v37 = vld [vmem:[%s7246_s26 + $0x40] sm:$0xf] }
  0x34   : > { %6561 = vmatmul.mubr.msk.bf16.gmra.mrb[16].mxu1 %vm356_vm1, %v7138_v20  ;;  %v2642_v56 = vsel %vm7278_vm4, %v2637_v46, %v2641_v32  ;;  %v6086_v58 = vrot.slane %v6038_v33, 9  ;;  %v3331_v59 = vrot.slane %v6039_v38, 5  ;;  %v2660_v60 = vor.u32 %v2659_v50, %v2656_v11  ;;  %v7143_v38 = vld [vmem:[%s7246_s26 + $0x9c] sm:$0xff]   ;;  %v6052_v43 = vld [vmem:[%s7246_s26 + $0x44] sm:$0x1]  ;;  %v7144_v46 = vld [vmem:[%s7246_s26 + $0xa8] sm:$0xff]  }
  0x35   : > { %6564 = vmatprep.mubr.msk.bf16.mxu1 %vm356_vm1, %v7139_v28  ;;  %6689 = vmatmul.mubr.msk.bf16.gmra.mrb[8].mxu0 %vm356_vm1, %v6010_v45  ;;  %v2670_v61 = vor.u32 %v2669_v52, %v2665_v51  ;;  %v2675_v62 = vrot.slane %v2673_v53, 5  ;;  %v3334_v63 = vrot.slane %v6040_v44, 5  ;;  %v2652_v0 = vsel %vm7278_vm4, %v2647_v57, %v2651_v36  ;;  %v6050_v36 = vld [vmem:[%s7246_s26 + $0x3c] sm:$0xe]  ;;  %v6053_v44 = vld [vmem:[%s7246_s26 + $0x48] sm:$0xe] }
  0x36   : > { %v3332_v1 = vsel %vm7353_vm7, %v6086_v58, %v3331_v59  ;;  %v3333_v2 = vrot.slane %v3331_v59, 4  ;;  %v6087_v4 = vrot.slane %v6041_v48, 9  ;;  %v6011_v7 = vcombine.low %v2642_v56, %v2652_v0  ;;  %v6055_v52 = vld [vmem:[%s7246_s26 + $0x50] sm:$0x1]  ;;  %v634_v56 = vld [vmem:[%s7246_s26] sm:$0xf] }
  0x37   : > { %v2661_v8 = vrot.slane %v2660_v60, 4  ;;  %v2671_v9 = vrot.slane %v2670_v61, 4  ;;  %v3338_v10 = vrot.slane %v6042_v49, 5  ;;  %v3341_v16 = vrot.slane %v6043_v55, 5  ;;  %v6054_v49 = vld [vmem:[%s7246_s26 + $0x4c] sm:$0xf] }
  0x38   : > { %v3335_v15 = vsel %vm7353_vm7, %v3333_v2, %v3334_v63  ;;  %v6088_v18 = vrot.slane %v6044_v5, 9  ;;  %v3345_v19 = vrot.slane %v6045_v14, 5  ;;  %6692 = vmatprep.mubr.msk.bf16.mxu0 %vm356_vm1, %v6011_v7  ;;  %v3348_v30 = vrot.slane %v6046_v17, 5  ;;  %v635_v60 = vld [vmem:[%s7246_s26 + $0x4] sm:$0xf] }
  0x39   : > { %v2666_v20 = vsel %vm7278_vm4, %v2661_v8, %v2665_v51  ;;  %v2676_v21 = vsel %vm7278_vm4, %v2671_v9, %v2675_v62  ;;  %v6104_v22 = vcombine.low %v3332_v1, %v3335_v15  ;;  %v3339_v27 = vsel %vm7353_vm7, %v6087_v4, %v3338_v10  ;;  %v636_v61 = vld [vmem:[%s7246_s26 + $0x8] sm:$0x1]  ;;  %v637_v2 = vld [vmem:[%s7246_s26 + $0xc] sm:$0xf]  ;;  %v638_v9 = vld [vmem:[%s7246_s26 + $0x10] sm:$0xf] }
  0x3a   : > { %v6012_v26 = vcombine.low %v2666_v20, %v2676_v21  ;;  %v3340_v28 = vrot.slane %v3338_v10, 4  ;;  %v3347_v29 = vrot.slane %v3345_v19, 4  ;;  %v6089_v31 = vrot.slane %v6047_v23, 9  ;;  %v6056_v17 = vld [vmem:[%s7246_s26 + $0x54] sm:$0xe] }
  0x3b   : > { %v3352_v32 = vrot.slane %v6048_v24, 5  ;;  %v3355_v33 = vrot.slane %v6049_v25, 5  ;;  %v3346_v35 = vsel %vm7353_vm7, %v6088_v18, %v3345_v19  ;;  %v6090_v47 = vrot.slane %v6050_v36, 9 }
  0x3c   : > { %6565 = vmatmul.mubr.msk.bf16.gmra.mrb[20].mxu1 %vm356_vm1, %v7140_v6  ;;  %v3342_v34 = vsel %vm7353_vm7, %v3340_v28, %v3341_v16  ;;  %v3349_v40 = vsel %vm7353_vm7, %v3347_v29, %v3348_v30  ;;  %v3359_v11 = vrot.slane %v6051_v37, 5  ;;  %v3362_v48 = vrot.slane %v6052_v43, 5  ;;  %v639_v16 = vld [vmem:[%s7246_s26 + $0x14] sm:$0x1] }
  0x3d   : > { %6568 = vmatprep.mubr.msk.bf16.mxu1 %vm356_vm1, %v7142_v13  ;;  %6693 = vmatmul.mubr.msk.bf16.gmra.mrb[12].mxu0 %vm356_vm1, %v6012_v26  ;;  %v7396_v41 = vsel %vm7353_vm7, %v6089_v31, %v3352_v32  ;;  %v3354_v42 = vrot.slane %v3352_v32, 4  ;;  %v6105_v45 = vcombine.low %v3339_v27, %v3342_v34  ;;  %v6106_v50 = vcombine.low %v3346_v35, %v3349_v40  ;;  %v6058_v27 = vld [vmem:[%s7246_s26 + $0x5c] sm:$0x1]  ;;  %v7145_v28 = vld [vmem:[%s7246_s26 + $0xb4] sm:$0xff]  }
  0x3e   : > { %6714 = vmatprep.mubr.msk.bf16.mxu0 %vm356_vm1, %v6104_v22  ;;  %v6091_v53 = vrot.slane %v6053_v44, 9  ;;  %v3366_v55 = vrot.slane %v6054_v49, 5  ;;  %v7413_v6 = vsel %vm7353_vm7, %v6090_v47, %v3359_v11  ;;  %v3361_v58 = vrot.slane %v3359_v11, 4  ;;  %v6057_v22 = vld [vmem:[%s7246_s26 + $0x58] sm:$0xf] }
  0x3f   : > { %v7405_v51 = vsel %vm7353_vm7, %v3354_v42, %v3355_v33  ;;  %v3369_v59 = vrot.slane %v6055_v52, 5  ;;  %v686_v0 = vshrl.u32 %v634_v56, 16  ;;  %v689_v1 = vshll.u32 %v634_v56, 16  ;;  %v6059_v33 = vld [vmem:[%s7246_s26 + $0x60] sm:$0xe] }
  0x40   : > { %v6107_v57 = vcombine.low %v7396_v41, %v7405_v51  ;;  %v7419_v62 = vsel %vm7353_vm7, %v6091_v53, %v3366_v55  ;;  %v3368_v63 = vrot.slane %v3366_v55, 4  ;;  %v7425_v4 = vsel %vm7353_vm7, %v3361_v58, %v3362_v48  ;;  %v6061_v44 = vld [vmem:[%s7246_s26 + $0x68] sm:$0x1]  ;;  %v640_v48 = vld [vmem:[%s7246_s26 + $0x18] sm:$0xf] }
  0x41   : > { %v695_v5 = vshll.u32 %v635_v60, 16  ;;  %v699_v7 = vshrl.u32 %v635_v60, 16  ;;  %v705_v8 = vshll.u32 %v636_v61, 16  ;;  %v6108_v10 = vcombine.low %v7413_v6, %v7425_v4  ;;  %v641_v55 = vld [vmem:[%s7246_s26 + $0x1c] sm:$0xf] }
  0x42   : > { %v7433_v13 = vsel %vm7353_vm7, %v3368_v63, %v3369_v59  ;;  %v688_v14 = vrot.slane %v686_v0, 4  ;;  %v691_v15 = vrot.slane %v689_v1, 5  ;;  %v710_v24 = vshrl.u32 %v637_v2, 16  ;;  %v642_v56 = vld [vmem:[%s7246_s26 + $0x20] sm:$0x1] }
  0x43   : > { %v6109_v18 = vcombine.low %v7419_v62, %v7433_v13  ;;  %v697_v19 = vrot.slane %v695_v5, 5  ;;  %v701_v20 = vrot.slane %v699_v7, 4  ;;  %v707_v21 = vrot.slane %v705_v8, 5  ;;  %v643_v63 = vld [vmem:[%s7246_s26 + $0x24] sm:$0xf] }
  0x44   : > { %6569 = vmatmul.mubr.msk.bf16.gmra.mrb[24].mxu1 %vm356_vm1, %v7143_v38  ;;  %v692_v23 = vor.u32 %v691_v15, %v688_v14  ;;  %v713_v25 = vshll.u32 %v637_v2, 16  ;;  %v719_v26 = vshll.u32 %v638_v9, 16  ;;  %v723_v30 = vshrl.u32 %v638_v9, 16  ;;  %v6060_v38 = vld [vmem:[%s7246_s26 + $0x64] sm:$0xf] }
  0x45   : > { %6572 = vmatprep.mubr.msk.bf16.mxu1 %vm356_vm1, %v7144_v46  ;;  %6715 = vmatmul.mubr.msk.bf16.vlgmr.msra.gmra.mrb[0].mxu0 %vm356_vm1, %v6105_v45  ;;  %v702_v29 = vor.u32 %v701_v20, %v697_v19  ;;  %v729_v31 = vshll.u32 %v639_v16, 16  ;;  %v6092_v32 = vrot.slane %v6056_v17, 9  ;;  %v712_v35 = vrot.slane %v710_v24, 4  ;;  %v644_v7 = vld [vmem:[%s7246_s26 + $0x28] sm:$0xf] }
  0x46   : > { %6747 = vmatpush3.bf16.msra.mxu0 %v7265_v12  ;;  %6718 = vmatprep.mubr.msk.bf16.mxu0 %vm356_vm1, %v6106_v50  ;;  %v693_v34 = vrot.slane %v692_v23, 4  ;;  %v715_v36 = vrot.slane %v713_v25, 5  ;;  %v721_v37 = vrot.slane %v719_v26, 5  ;;  %v725_v42 = vrot.slane %v723_v30, 4  ;;  %v7146_v17 = vld [vmem:[%s8509_s1 + $0x10] sm:$0x3f]  }
  0x47   : > { %v703_v40 = vrot.slane %v702_v29, 4  ;;  %v731_v12 = vrot.slane %v729_v31, 5  ;;  %v3373_v43 = vrot.slane %v6057_v22, 5  ;;  %v3376_v47 = vrot.slane %v6058_v27, 5  ;;  %7108 = vmatprep.subr.msk.bf16.mxu1 %vm405_vm0, %v7146_v17  ;;  %v6062_v25 = vld [vmem:[%s7246_s26 + $0x6c] sm:$0xe] }
  0x48   : > { %v698_v45 = vsel %vm7278_vm4, %v693_v34, %v697_v19  ;;  %v716_v46 = vor.u32 %v715_v36, %v712_v35  ;;  %v6093_v11 = vrot.slane %v6059_v33, 9  ;;  %v726_v50 = vor.u32 %v725_v42, %v721_v37  ;;  %v6063_v26 = vld [vmem:[%s7246_s26 + $0x70] sm:$0xf]  ;;  %v6064_v31 = vld [vmem:[%s7246_s26 + $0x74] sm:$0x1] }
  0x49   : > { %v708_v49 = vsel %vm7278_vm4, %v703_v40, %v707_v21  ;;  %v7456_v52 = vsel %vm7353_vm7, %v6092_v32, %v3373_v43  ;;  %v3375_v53 = vrot.slane %v3373_v43, 4  ;;  %v3380_v60 = vrot.slane %v6060_v38, 5  ;;  %v6065_v36 = vld [vmem:[%s7246_s26 + $0x78] sm:$0xe] }
  0x4a   : > { %v5804_v58 = vcombine.low %v698_v45, %v708_v49  ;;  %v717_v59 = vrot.slane %v716_v46, 4  ;;  %v3383_v61 = vrot.slane %v6061_v44, 5  ;;  %v727_v0 = vrot.slane %v726_v50, 4 }
  0x4b   : > { %v3377_v1 = vsel %vm7353_vm7, %v3375_v53, %v3376_v47  ;;  %v734_v2 = vshrl.u32 %v640_v48, 16  ;;  %v737_v5 = vshll.u32 %v640_v48, 16  ;;  %v7474_v14 = vsel %vm7353_vm7, %v6093_v11, %v3380_v60  ;;  %v6067_v47 = vld [vmem:[%s7246_s26 + $0x80] sm:$0x1] }
  0x4c   : > { %6573 = vmatmul.mubr.msk.bf16.gmra.mrb[28].mxu1 %vm356_vm1, %v7145_v28  ;;  %v722_v8 = vsel %vm7278_vm4, %v717_v59, %v721_v37  ;;  %v6110_v9 = vcombine.low %v7456_v52, %v3377_v1  ;;  %v3382_v15 = vrot.slane %v3380_v60, 4  ;;  %v732_v41 = vsel %vm7278_vm4, %v727_v0, %v731_v12  ;;  %v6066_v12 = vld [vmem:[%s7246_s26 + $0x7c] sm:$0xf]  ;;  %v646_v52 = vld [vmem:[%s7246_s26 + $0x30] sm:$0xf] }
  0x4d   : > { %6719 = vmatmul.mubr.msk.bf16.gmra.mrb[4].mxu0 %vm356_vm1, %v6107_v57  ;;  %6578 = vmatprep.mubr.msk.bf16.mxu1 %vm356_vm1, %v5804_v58  ;;  %v736_v51 = vrot.slane %v734_v2, 4  ;;  %v739_v57 = vrot.slane %v737_v5, 5  ;;  %v743_v16 = vshll.u32 %v641_v55, 16  ;;  %v5805_v19 = vcombine.low %v722_v8, %v732_v41  ;;  %v647_v60 = vld [vmem:[%s7246_s26 + $0x34] sm:$0xf] }
  0x4e   : > { %6722 = vmatprep.mubr.msk.bf16.mxu0 %vm356_vm1, %v6108_v10  ;;  %v7487_v20 = vsel %vm7353_vm7, %v3382_v15, %v3383_v61  ;;  %v747_v6 = vshrl.u32 %v641_v55, 16  ;;  %v753_v4 = vshll.u32 %v642_v56, 16  ;;  %v645_v10 = vld [vmem:[%s7246_s26 + $0x2c] sm:$0x1]  ;;  %v758_v24 = vshrl.u32 %v643_v63, 16 }
  0x4f   : > { %v6111_v21 = vcombine.low %v7474_v14, %v7487_v20  ;;  %v740_v22 = vor.u32 %v739_v57, %v736_v51  ;;  %v745_v23 = vrot.slane %v743_v16, 5  ;;  %v761_v29 = vshll.u32 %v643_v63, 16  ;;  %v648_v1 = vld [vmem:[%s7246_s26 + $0x38] sm:$0x1]  ;;  %v649_v15 = vld [vmem:[%s7246_s26 + $0x3c] sm:$0xf] }
  0x50   : > { %v749_v27 = vrot.slane %v747_v6, 4  ;;  %v755_v28 = vrot.slane %v753_v4, 5  ;;  %v767_v30 = vshll.u32 %v644_v7, 16  ;;  %v760_v33 = vrot.slane %v758_v24, 4 }
  0x51   : > { %v741_v32 = vrot.slane %v740_v22, 4  ;;  %v771_v34 = vshrl.u32 %v644_v7, 16  ;;  %v777_v35 = vshll.u32 %v645_v10, 16  ;;  %v763_v38 = vrot.slane %v761_v29, 5  ;;  %v651_v22 = vld [vmem:[%s7246_s26 + $0x44] sm:$0x1] }
  0x52   : > { %v750_v37 = vor.u32 %v749_v27, %v745_v23  ;;  %v769_v40 = vrot.slane %v767_v30, 5  ;;  %v6094_v42 = vrot.slane %v6062_v25, 9  ;;  %v3387_v46 = vrot.slane %v6063_v26, 5 }
  0x53   : > { %v746_v43 = vsel %vm7278_vm4, %v741_v32, %v745_v23  ;;  %v773_v44 = vrot.slane %v771_v34, 4  ;;  %v779_v45 = vrot.slane %v777_v35, 5  ;;  %v764_v48 = vor.u32 %v763_v38, %v760_v33  ;;  %v6068_v23 = vld [vmem:[%s7246_s26 + $0x84] sm:$0xe]  ;;  %v6070_v33 = vld [vmem:[%s7246_s26 + $0x8c] sm:$0x1] }
  0x54   : > { %6579 = vmatmul.mubr.msk.bf16.vlgmr.msra.gmra.mrb[0].mxu1 %vm356_vm1, %v5805_v19  ;;  %v751_v11 = vrot.slane %v750_v37, 4  ;;  %v3390_v49 = vrot.slane %v6064_v31, 5  ;;  %v1781_v50 = vsel %vm405_vm0, %v7146_v17, 0  ;;  %v3388_v55 = vsel %vm7353_vm7, %v6094_v42, %v3387_v46  ;;  %v650_v17 = vld [vmem:[%s7246_s26 + $0x40] sm:$0xf] }
  0x55   : > { %6723 = vmatmul.mubr.msk.bf16.gmra.mrb[8].mxu0 %vm356_vm1, %v6109_v18  ;;  %v774_v53 = vor.u32 %v773_v44, %v769_v40  ;;  %v3389_v56 = vrot.slane %v3387_v46, 4  ;;  %6611 = vmatpush3.bf16.msra.mxu1 %v1781_v50  ;;  %v6095_v62 = vrot.slane %v6065_v36, 9  ;;  %v765_v18 = vrot.slane %v764_v48, 4  ;;  %v6071_v38 = vld [vmem:[%s7246_s26 + $0x90] sm:$0xe] }
  0x56   : > { %6726 = vmatprep.mubr.msk.bf16.mxu0 %vm356_vm1, %v6110_v9  ;;  %v756_v13 = vsel %vm7278_vm4, %v751_v11, %v755_v28  ;;  %v3394_v58 = vrot.slane %v6066_v12, 5  ;;  %v3397_v59 = vrot.slane %v6067_v47, 5  ;;  %v782_v2 = vshrl.u32 %v646_v52, 16  ;;  %v6069_v28 = vld [vmem:[%s7246_s26 + $0x88] sm:$0xf] }
  0x57   : > { %v5806_v61 = vcombine.low %v746_v43, %v756_v13  ;;  %v775_v63 = vrot.slane %v774_v53, 4  ;;  %v3391_v0 = vsel %vm7353_vm7, %v3389_v56, %v3390_v49  ;;  %v770_v5 = vsel %vm7278_vm4, %v765_v18, %v769_v40  ;;  %v6072_v42 = vld [vmem:[%s7246_s26 + $0x94] sm:$0xf]  ;;  %v6073_v46 = vld [vmem:[%s7246_s26 + $0x98] sm:$0x1] }
  0x58   : > { %v6112_v7 = vcombine.low %v3388_v55, %v3391_v0  ;;  %v7521_v8 = vsel %vm7353_vm7, %v6095_v62, %v3394_v58  ;;  %v3396_v9 = vrot.slane %v3394_v58, 4  ;;  %v784_v51 = vrot.slane %v782_v2, 4  ;;  %v652_v50 = vld [vmem:[%s7246_s26 + $0x48] sm:$0xf]  ;;  %v654_v0 = vld [vmem:[%s7246_s26 + $0x50] sm:$0x1] }
  0x59   : > { %6582 = vmatprep.mubr.msk.bf16.mxu1 %vm356_vm1, %v5806_v61  ;;  %v780_v41 = vsel %vm7278_vm4, %v775_v63, %v779_v45  ;;  %v785_v57 = vshll.u32 %v646_v52, 16  ;;  %v791_v16 = vshll.u32 %v647_v60, 16  ;;  %v795_v4 = vshrl.u32 %v647_v60, 16 }
  0x5a   : > { %v5807_v19 = vcombine.low %v770_v5, %v780_v41  ;;  %v3398_v6 = vsel %vm7353_vm7, %v3396_v9, %v3397_v59  ;;  %v801_v10 = vshll.u32 %v648_v1, 16  ;;  %v806_v27 = vshrl.u32 %v649_v15, 16  ;;  %v653_v59 = vld [vmem:[%s7246_s26 + $0x4c] sm:$0xf]  ;;  %v655_v9 = vld [vmem:[%s7246_s26 + $0x54] sm:$0xf] }
  0x5b   : > { %v6113_v24 = vcombine.low %v7521_v8, %v3398_v6  ;;  %v787_v25 = vrot.slane %v785_v57, 5  ;;  %v793_v26 = vrot.slane %v791_v16, 5  ;;  %v797_v29 = vrot.slane %v795_v4, 4  ;;  %v656_v16 = vld [vmem:[%s7246_s26 + $0x58] sm:$0xf] }
  0x5c   : > { %6583 = vmatmul.mubr.msk.bf16.gmra.mrb[4].mxu1 %vm356_vm1, %v5807_v19  ;;  %v803_v30 = vrot.slane %v801_v10, 5  ;;  %v809_v31 = vshll.u32 %v649_v15, 16  ;;  %v815_v32 = vshll.u32 %v650_v17, 16  ;;  %v808_v35 = vrot.slane %v806_v27, 4  ;;  %v657_v10 = vld [vmem:[%s7246_s26 + $0x5c] sm:$0x1] }
  0x5d   : > { %6727 = vmatmul.mubr.msk.bf16.gmra.mrb[12].mxu0 %vm356_vm1, %v6111_v21  ;;  %v788_v34 = vor.u32 %v787_v25, %v784_v51  ;;  %v819_v36 = vshrl.u32 %v650_v17, 16  ;;  %v825_v37 = vshll.u32 %v651_v22, 16  ;;  %v798_v14 = vor.u32 %v797_v29, %v793_v26  ;;  %v6074_v22 = vld [vmem:[%s7246_s26 + $0x9c] sm:$0xe]  ;;  %v6075_v27 = vld [vmem:[%s7246_s26 + $0xa0] sm:$0xf] }
  0x5e   : > { %6730 = vmatprep.mubr.msk.bf16.mxu0 %vm356_vm1, %v6112_v7  ;;  %v811_v20 = vrot.slane %v809_v31, 5  ;;  %v817_v21 = vrot.slane %v815_v32, 5  ;;  %v6096_v40 = vrot.slane %v6068_v23, 9  ;;  %v3401_v45 = vrot.slane %v6069_v28, 5  ;;  %v6076_v32 = vld [vmem:[%s7246_s26 + $0xa4] sm:$0x1] }
  0x5f   : > { %v789_v12 = vrot.slane %v788_v34, 4  ;;  %v821_v43 = vrot.slane %v819_v36, 4  ;;  %v827_v44 = vrot.slane %v825_v37, 5  ;;  %v799_v47 = vrot.slane %v798_v14, 4  ;;  %v6077_v37 = vld [vmem:[%s7246_s26 + $0xa8] sm:$0xe] }
  0x60   : > { %v812_v11 = vor.u32 %v811_v20, %v808_v35  ;;  %v3404_v48 = vrot.slane %v6070_v33, 5  ;;  %v6097_v49 = vrot.slane %v6071_v38, 9  ;;  %v3402_v55 = vsel %vm7353_vm7, %v6096_v40, %v3401_v45  ;;  %v6078_v40 = vld [vmem:[%s7246_s26 + $0xac] sm:$0xf] }
  0x61   : > { %v794_v52 = vsel %vm7278_vm4, %v789_v12, %v793_v26  ;;  %v822_v53 = vor.u32 %v821_v43, %v817_v21  ;;  %v3403_v56 = vrot.slane %v3401_v45, 4  ;;  %v804_v62 = vsel %vm7278_vm4, %v799_v47, %v803_v30  ;;  %v6079_v45 = vld [vmem:[%s7246_s26 + $0xb0] sm:$0x1] }
  0x62   : > { %v813_v13 = vrot.slane %v812_v11, 4  ;;  %v3408_v18 = vrot.slane %v6072_v42, 5  ;;  %v3411_v58 = vrot.slane %v6073_v46, 5  ;;  %v5808_v60 = vcombine.low %v794_v52, %v804_v62 }
  0x63   : > { %v823_v61 = vrot.slane %v822_v53, 4  ;;  %v3405_v63 = vsel %vm7353_vm7, %v3403_v56, %v3404_v48  ;;  %v830_v1 = vshrl.u32 %v652_v50, 16  ;;  %v833_v51 = vshll.u32 %v652_v50, 16 }
  0x64   : > { %v818_v2 = vsel %vm7278_vm4, %v813_v13, %v817_v21  ;;  %v6114_v5 = vcombine.low %v3402_v55, %v3405_v63  ;;  %v3409_v7 = vsel %vm7353_vm7, %v6097_v49, %v3408_v18  ;;  %v3410_v8 = vrot.slane %v3408_v18, 4  ;;  %6586 = vmatprep.mubr.msk.bf16.mxu1 %vm356_vm1, %v5808_v60  ;;  %v658_v49 = vld [vmem:[%s7246_s26 + $0x60] sm:$0xf]  ;;  %v660_v63 = vld [vmem:[%s7246_s26 + $0x68] sm:$0x1] }
  0x65   : > { %6731 = vmatmul.mubr.msk.bf16.gmra.mrb[16].mxu0 %vm356_vm1, %v6113_v24  ;;  %v828_v15 = vsel %vm7278_vm4, %v823_v61, %v827_v44  ;;  %v832_v41 = vrot.slane %v830_v1, 4  ;;  %v839_v57 = vshll.u32 %v653_v59, 16  ;;  %v843_v6 = vshrl.u32 %v653_v59, 16  ;;  %v661_v1 = vld [vmem:[%s7246_s26 + $0x6c] sm:$0xf] }
  0x66   : > { %v5809_v17 = vcombine.low %v818_v2, %v828_v15  ;;  %6734 = vmatprep.mubr.msk.bf16.mxu0 %vm356_vm1, %v6114_v5  ;;  %v3412_v19 = vsel %vm7353_vm7, %v3410_v8, %v3411_v58  ;;  %v849_v4 = vshll.u32 %v654_v0, 16  ;;  %v835_v24 = vrot.slane %v833_v51, 5  ;;  %v659_v58 = vld [vmem:[%s7246_s26 + $0x64] sm:$0xf]  ;;  %v663_v15 = vld [vmem:[%s7246_s26 + $0x74] sm:$0x1] }
  0x67   : > { %v6115_v23 = vcombine.low %v3409_v7, %v3412_v19  ;;  %v841_v25 = vrot.slane %v839_v57, 5  ;;  %v854_v26 = vshrl.u32 %v655_v9, 16  ;;  %v845_v28 = vrot.slane %v843_v6, 4 }
  0x68   : > { %6587 = vmatmul.mubr.msk.bf16.gmra.mrb[8].mxu1 %vm356_vm1, %v5809_v17  ;;  %v851_v29 = vrot.slane %v849_v4, 5  ;;  %v857_v30 = vshll.u32 %v655_v9, 16  ;;  %v863_v31 = vshll.u32 %v656_v16, 16  ;;  %v836_v33 = vor.u32 %v835_v24, %v832_v41  ;;  %v662_v9 = vld [vmem:[%s7246_s26 + $0x70] sm:$0xf] }
  0x69   : > { %v856_v34 = vrot.slane %v854_v26, 4  ;;  %v867_v35 = vshrl.u32 %v656_v16, 16  ;;  %v873_v36 = vshll.u32 %v657_v10, 16  ;;  %v846_v38 = vor.u32 %v845_v28, %v841_v25  ;;  %v6080_v17 = vld [vmem:[%s7246_s26 + $0xb4] sm:$0xe] }
  0x6a   : > { %v859_v14 = vrot.slane %v857_v30, 5  ;;  %v865_v20 = vrot.slane %v863_v31, 5  ;;  %v6098_v21 = vrot.slane %v6074_v22, 9  ;;  %v837_v42 = vrot.slane %v836_v33, 4  ;;  %v6081_v22 = vld [vmem:[%s7246_s26 + $0xb8] sm:$0xf] }
  0x6b   : > { %v869_v12 = vrot.slane %v867_v35, 4  ;;  %v875_v43 = vrot.slane %v873_v36, 5  ;;  %v3415_v44 = vrot.slane %v6075_v27, 5  ;;  %v847_v46 = vrot.slane %v846_v38, 4  ;;  %v6082_v27 = vld [vmem:[%s7246_s26 + $0xbc] sm:$0x1] }
  0x6c   : > { %v860_v47 = vor.u32 %v859_v14, %v856_v34  ;;  %v3418_v11 = vrot.slane %v6076_v32, 5  ;;  %v6099_v48 = vrot.slane %v6077_v37, 9  ;;  %v842_v50 = vsel %vm7278_vm4, %v837_v42, %v841_v25  ;;  %v6083_v28 = vld [vmem:[%s7246_s26 + $0xc0] sm:$0xe]  ;;  %v7609_v33 = vld [vmem:[%s8509_s1 + $0x38] sm:$0x3f]  }
  0x6d   : > { %6735 = vmatmul.mubr.msk.bf16.gmra.mrb[20].mxu0 %vm356_vm1, %v6115_v23  ;;  %v870_v52 = vor.u32 %v869_v12, %v865_v20  ;;  %v3416_v53 = vsel %vm7353_vm7, %v6098_v21, %v3415_v44  ;;  %v3417_v55 = vrot.slane %v3415_v44, 4  ;;  %v852_v56 = vsel %vm7278_vm4, %v847_v46, %v851_v29  ;;  %v6084_v38 = vld [vmem:[%s7246_s26 + $0xc4] sm:$0xf]  ;;  %7114 = vmatprep.subr.msk.bf16.mxu0 %vm405_vm0, %v7609_v33 }
  0x6e   : > { %v861_v62 = vrot.slane %v860_v47, 4  ;;  %v3422_v13 = vrot.slane %v6078_v40, 5  ;;  %v3425_v18 = vrot.slane %v6079_v45, 5  ;;  %v5810_v59 = vcombine.low %v842_v50, %v852_v56  ;;  %v6085_v45 = vld [vmem:[%s7246_s26 + $0xc8] sm:$0x1] }
  0x6f   : > { %v871_v60 = vrot.slane %v870_v52, 4  ;;  %v3419_v61 = vsel %vm7353_vm7, %v3417_v55, %v3418_v11  ;;  %v878_v0 = vshrl.u32 %v658_v49, 16  ;;  %v881_v57 = vshll.u32 %v658_v49, 16  ;;  %v664_v49 = vld [vmem:[%s7246_s26 + $0x78] sm:$0xf] }
  0x70   : > { %v866_v2 = vsel %vm7278_vm4, %v861_v62, %v865_v20  ;;  %v6116_v5 = vcombine.low %v3416_v53, %v3419_v61  ;;  %v3423_v7 = vsel %vm7353_vm7, %v6099_v48, %v3422_v13  ;;  %v3424_v8 = vrot.slane %v3422_v13, 4  ;;  %6590 = vmatprep.mubr.msk.bf16.mxu1 %vm356_vm1, %v5810_v59  ;;  %v665_v56 = vld [vmem:[%s7246_s26 + $0x7c] sm:$0xf]  ;;  %v666_v62 = vld [vmem:[%s7246_s26 + $0x80] sm:$0x1] }
  0x71   : > { %v876_v41 = vsel %vm7278_vm4, %v871_v60, %v875_v43  ;;  %v880_v51 = vrot.slane %v878_v0, 4  ;;  %v887_v16 = vshll.u32 %v659_v58, 16  ;;  %v891_v4 = vshrl.u32 %v659_v58, 16  ;;  %v667_v60 = vld [vmem:[%s7246_s26 + $0x84] sm:$0xf] }
  0x72   : > { %v5811_v19 = vcombine.low %v866_v2, %v876_v41  ;;  %6738 = vmatprep.mubr.msk.bf16.mxu0 %vm356_vm1, %v6116_v5  ;;  %v3426_v6 = vsel %vm7353_vm7, %v3424_v8, %v3425_v18  ;;  %v897_v10 = vshll.u32 %v660_v63, 16  ;;  %v883_v24 = vrot.slane %v881_v57, 5  ;;  %v668_v2 = vld [vmem:[%s7246_s26 + $0x88] sm:$0xf] }
  0x73   : > { %v6117_v23 = vcombine.low %v3423_v7, %v3426_v6  ;;  %v889_v25 = vrot.slane %v887_v16, 5  ;;  %v902_v26 = vshrl.u32 %v661_v1, 16  ;;  %v893_v29 = vrot.slane %v891_v4, 4  ;;  %v669_v4 = vld [vmem:[%s7246_s26 + $0x8c] sm:$0x1] }
  0x74   : > { %6591 = vmatmul.mubr.msk.bf16.gmra.mrb[12].mxu1 %vm356_vm1, %v5811_v19  ;;  %v899_v30 = vrot.slane %v897_v10, 5  ;;  %v905_v31 = vshll.u32 %v661_v1, 16  ;;  %v911_v32 = vshll.u32 %v662_v9, 16  ;;  %v884_v34 = vor.u32 %v883_v24, %v880_v51  ;;  %v7147_v10 = vld [vmem:[%s7246_s26 + $0x18] sm:$0xff]  }
  0x75   : > { %6739 = vmatmul.mubr.msk.bf16.gmra.mrb[24].mxu0 %vm356_vm1, %v6117_v23  ;;  %v904_v35 = vrot.slane %v902_v26, 4  ;;  %v915_v36 = vshrl.u32 %v662_v9, 16  ;;  %v921_v37 = vshll.u32 %v663_v15, 16  ;;  %v894_v14 = vor.u32 %v893_v29, %v889_v25 }
  0x76   : > { %v907_v20 = vrot.slane %v905_v31, 5  ;;  %v913_v21 = vrot.slane %v911_v32, 5  ;;  %v6100_v40 = vrot.slane %v6080_v17, 9  ;;  %v885_v42 = vrot.slane %v884_v34, 4 }
  0x77   : > { %v917_v12 = vrot.slane %v915_v36, 4  ;;  %v923_v43 = vrot.slane %v921_v37, 5  ;;  %v3429_v44 = vrot.slane %v6081_v22, 5  ;;  %v895_v46 = vrot.slane %v894_v14, 4  ;;  %v671_v36 = vld [vmem:[%s7246_s26 + $0x94] sm:$0xf] }
  0x78   : > { %v908_v47 = vor.u32 %v907_v20, %v904_v35  ;;  %v3432_v11 = vrot.slane %v6082_v27, 5  ;;  %v6101_v48 = vrot.slane %v6083_v28, 9  ;;  %v890_v50 = vsel %vm7278_vm4, %v885_v42, %v889_v25 }
  0x79   : > { %v918_v52 = vor.u32 %v917_v12, %v913_v21  ;;  %v3430_v53 = vsel %vm7353_vm7, %v6100_v40, %v3429_v44  ;;  %v3431_v55 = vrot.slane %v3429_v44, 4  ;;  %v900_v13 = vsel %vm7278_vm4, %v895_v46, %v899_v30  ;;  %v670_v30 = vld [vmem:[%s7246_s26 + $0x90] sm:$0xf]  ;;  %v673_v44 = vld [vmem:[%s7246_s26 + $0x9c] sm:$0xf] }
  0x7a   : > { %v909_v18 = vrot.slane %v908_v47, 4  ;;  %v3436_v58 = vrot.slane %v6084_v38, 5  ;;  %v3439_v59 = vrot.slane %v6085_v45, 5  ;;  %v5812_v61 = vcombine.low %v890_v50, %v900_v13  ;;  %v7149_v47 = vld [vmem:[%s7246_s26 + $0x24] sm:$0xff]   ;;  %v674_v13 = vld [vmem:[%s7246_s26 + $0xa0] sm:$0xf] }
  0x7b   : > { %v919_v63 = vrot.slane %v918_v52, 4  ;;  %v3433_v0 = vsel %vm7353_vm7, %v3431_v55, %v3432_v11  ;;  %v926_v1 = vshrl.u32 %v664_v49, 16  ;;  %v929_v51 = vshll.u32 %v664_v49, 16 }
  0x7c   : > { %v914_v5 = vsel %vm7278_vm4, %v909_v18, %v913_v21  ;;  %v6118_v7 = vcombine.low %v3430_v53, %v3433_v0  ;;  %v3437_v8 = vsel %vm7353_vm7, %v6101_v48, %v3436_v58  ;;  %v3438_v9 = vrot.slane %v3436_v58, 4  ;;  %6594 = vmatprep.mubr.msk.bf16.mxu1 %vm356_vm1, %v5812_v61  ;;  %v672_v21 = vld [vmem:[%s7246_s26 + $0x98] sm:$0x1]  ;;  %v7150_v18 = vld [vmem:[%s7246_s26 + $0x30] sm:$0xff]  }
  0x7d   : > { %v924_v15 = vsel %vm7278_vm4, %v919_v63, %v923_v43  ;;  %v928_v41 = vrot.slane %v926_v1, 4  ;;  %v935_v57 = vshll.u32 %v665_v56, 16  ;;  %v939_v19 = vshrl.u32 %v665_v56, 16  ;;  %v675_v1 = vld [vmem:[%s7246_s26 + $0xa4] sm:$0x1] }
  0x7e   : > { %v5813_v16 = vcombine.low %v914_v5, %v924_v15  ;;  %6742 = vmatprep.mubr.msk.bf16.mxu0 %vm356_vm1, %v6118_v7  ;;  %v3440_v17 = vsel %vm7353_vm7, %v3438_v9, %v3439_v59  ;;  %v945_v6 = vshll.u32 %v666_v62, 16  ;;  %v931_v23 = vrot.slane %v929_v51, 5  ;;  %v677_v51 = vld [vmem:[%s7246_s26 + $0xac] sm:$0xf] }
  0x7f   : > { %v6119_v22 = vcombine.low %v3437_v8, %v3440_v17  ;;  %v937_v24 = vrot.slane %v935_v57, 5  ;;  %v950_v25 = vshrl.u32 %v667_v60, 16  ;;  %v941_v26 = vrot.slane %v939_v19, 4 }
  0x80   : > { %6595 = vmatmul.mubr.msk.bf16.gmra.mrb[16].mxu1 %vm356_vm1, %v5813_v16  ;;  %v947_v27 = vrot.slane %v945_v6, 5  ;;  %v953_v28 = vshll.u32 %v667_v60, 16  ;;  %v959_v29 = vshll.u32 %v668_v2, 16  ;;  %v932_v31 = vor.u32 %v931_v23, %v928_v41  ;;  %v676_v41 = vld [vmem:[%s7246_s26 + $0xa8] sm:$0xf] }
  0x81   : > { %6743 = vmatmul.mubr.msk.bf16.gmra.mrb[28].mxu0 %vm356_vm1, %v6119_v22  ;;  %v952_v32 = vrot.slane %v950_v25, 4  ;;  %v963_v34 = vshrl.u32 %v668_v2, 16  ;;  %v969_v35 = vshll.u32 %v669_v4, 16  ;;  %v942_v37 = vor.u32 %v941_v26, %v937_v24  ;;  %v678_v6 = vld [vmem:[%s7246_s26 + $0xb0] sm:$0x1] }
  0x82   : > { %v955_v38 = vrot.slane %v953_v28, 5  ;;  %v961_v14 = vrot.slane %v959_v29, 5  ;;  %6748 = vmatprep.mubr.msk.bf16.mxu0 %vm356_vm1, %v7147_v10  ;;  %v4803_v20 = vsel %vm405_vm0, %v7609_v33, 0  ;;  %v933_v40 = vrot.slane %v932_v31, 4  ;;  %v7151_v31 = vld [vmem:[%s7246_s26 + $0x3c] sm:$0xff]  }
  0x83   : > { %v965_v42 = vrot.slane %v963_v34, 4  ;;  %v971_v12 = vrot.slane %v969_v35, 5  ;;  %v974_v43 = vshrl.u32 %v670_v30, 16  ;;  %v943_v45 = vrot.slane %v942_v37, 4  ;;  %v679_v34 = vld [vmem:[%s7246_s26 + $0xb4] sm:$0xf] }
  0x84   : > { %v956_v46 = vor.u32 %v955_v38, %v952_v32  ;;  %v977_v11 = vshll.u32 %v670_v30, 16  ;;  %v983_v48 = vshll.u32 %v671_v36, 16  ;;  %v938_v49 = vsel %vm7278_vm4, %v933_v40, %v937_v24 }
  0x85   : > { %v966_v50 = vor.u32 %v965_v42, %v961_v14  ;;  %v976_v52 = vrot.slane %v974_v43, 4  ;;  %v987_v33 = vshrl.u32 %v671_v36, 16  ;;  %v948_v53 = vsel %vm7278_vm4, %v943_v45, %v947_v27  ;;  %v681_v43 = vld [vmem:[%s7246_s26 + $0xbc] sm:$0x1] }
  0x86   : > { %v957_v55 = vrot.slane %v956_v46, 4  ;;  %v979_v56 = vrot.slane %v977_v11, 5  ;;  %v985_v62 = vrot.slane %v983_v48, 5  ;;  %v5814_v58 = vcombine.low %v938_v49, %v948_v53  ;;  %v1433_v11 = vld [vmem:[%s7246_s26] sm:$0xe] }
  0x87   : > { %v967_v59 = vrot.slane %v966_v50, 4  ;;  %v989_v60 = vrot.slane %v987_v33, 4  ;;  %v993_v61 = vshll.u32 %v672_v21, 16  ;;  %v998_v2 = vshrl.u32 %v673_v44, 16  ;;  %v1434_v48 = vld [vmem:[%s7246_s26 + $0x4] sm:$0xf] }
  0x88   : > { %v962_v63 = vsel %vm7278_vm4, %v957_v55, %v961_v14  ;;  %v980_v0 = vor.u32 %v979_v56, %v976_v52  ;;  %v1001_v5 = vshll.u32 %v673_v44, 16  ;;  %6598 = vmatprep.mubr.msk.bf16.mxu1 %vm356_vm1, %v5814_v58  ;;  %v1007_v15 = vshll.u32 %v674_v13, 16  ;;  %v680_v14 = vld [vmem:[%s7246_s26 + $0xb8] sm:$0xf]  ;;  %v1435_v53 = vld [vmem:[%s7246_s26 + $0x8] sm:$0x1] }
  0x89   : > { %v972_v7 = vsel %vm7278_vm4, %v967_v59, %v971_v12  ;;  %6749 = vmatmul.mubr.msk.bf16.vlgmr.msra.gmra.mrb[0].mxu0 %vm356_vm1, %v7149_v47  ;;  %v990_v8 = vor.u32 %v989_v60, %v985_v62  ;;  %v995_v9 = vrot.slane %v993_v61, 5  ;;  %v1000_v17 = vrot.slane %v998_v2, 4  ;;  %v7686_v55 = vld [vmem:[%s7246_s26 + $0xc] sm:$0xe]  ;;  %v1437_v58 = vld [vmem:[%s7246_s26 + $0x10] sm:$0xf] }
  0x8a   : > { %v5815_v57 = vcombine.low %v962_v63, %v972_v7  ;;  %6781 = vmatpush3.bf16.msra.mxu0 %v4803_v20  ;;  %v981_v16 = vrot.slane %v980_v0, 4  ;;  %v1003_v19 = vrot.slane %v1001_v5, 5  ;;  %6752 = vmatprep.mubr.msk.bf16.mxu0 %vm356_vm1, %v7150_v18  ;;  %v1009_v10 = vrot.slane %v1007_v15, 5  ;;  %v7152_v20 = vld [vmem:[%s7246_s26 + $0x48] sm:$0xff]   ;;  %v1438_v0 = vld [vmem:[%s7246_s26 + $0x14] sm:$0x1] }
  0x8b   : > { %v991_v4 = vrot.slane %v990_v8, 4  ;;  %v1011_v22 = vshrl.u32 %v674_v13, 16  ;;  %v1017_v23 = vshll.u32 %v675_v1, 16  ;;  %v1022_v26 = vshrl.u32 %v676_v41, 16  ;;  %v7156_v1 = vld [vmem:[%s8509_s1 + $0x18] sm:$0x3f]  }
  0x8c   : > { %6599 = vmatmul.mubr.msk.bf16.gmra.mrb[20].mxu1 %vm356_vm1, %v5815_v57  ;;  %v986_v24 = vsel %vm7278_vm4, %v981_v16, %v985_v62  ;;  %v1004_v25 = vor.u32 %v1003_v19, %v1000_v17  ;;  %v1025_v27 = vshll.u32 %v676_v41, 16  ;;  %v1031_v32 = vshll.u32 %v677_v51, 16  ;;  %v1439_v16 = vld [vmem:[%s7246_s26 + $0x18] sm:$0xe]  ;;  %v1440_v17 = vld [vmem:[%s7246_s26 + $0x1c] sm:$0xf]  ;;  %7109 = vmatprep.subr.msk.bf16.mxu1 %vm405_vm0, %v7156_v1 }
  0x8d   : > { %v996_v28 = vsel %vm7278_vm4, %v991_v4, %v995_v9  ;;  %v1013_v29 = vrot.slane %v1011_v22, 4  ;;  %v1019_v30 = vrot.slane %v1017_v23, 5  ;;  %v1024_v37 = vrot.slane %v1022_v26, 4  ;;  %v7153_v9 = vld [vmem:[%s7246_s26 + $0x54] sm:$0xff]   ;;  %v7154_v22 = vld [vmem:[%s7246_s26 + $0x60] sm:$0xff]  }
  0x8e   : > { %v5816_v35 = vcombine.low %v986_v24, %v996_v28  ;;  %v1005_v36 = vrot.slane %v1004_v25, 4  ;;  %v1027_v38 = vrot.slane %v1025_v27, 5  ;;  %v1033_v40 = vrot.slane %v1031_v32, 5  ;;  %v1441_v23 = vld [vmem:[%s7246_s26 + $0x20] sm:$0x1] }
  0x8f   : > { %v1014_v21 = vor.u32 %v1013_v29, %v1009_v10  ;;  %v1035_v42 = vshrl.u32 %v677_v51, 16  ;;  %v1041_v12 = vshll.u32 %v678_v6, 16  ;;  %v1046_v46 = vshrl.u32 %v679_v34, 16  ;;  %v1442_v28 = vld [vmem:[%s7246_s26 + $0x24] sm:$0xe] }
  0x90   : > { %6602 = vmatprep.mubr.msk.bf16.mxu1 %vm356_vm1, %v5816_v35  ;;  %v1010_v44 = vsel %vm7278_vm4, %v1005_v36, %v1009_v10  ;;  %v1028_v45 = vor.u32 %v1027_v38, %v1024_v37  ;;  %v1049_v47 = vshll.u32 %v679_v34, 16  ;;  %v1055_v33 = vshll.u32 %v680_v14, 16  ;;  %v1443_v29 = vld [vmem:[%s7246_s26 + $0x28] sm:$0xf]  ;;  %v1444_v35 = vld [vmem:[%s7246_s26 + $0x2c] sm:$0x1] }
  0x91   : > { %v1015_v49 = vrot.slane %v1014_v21, 4  ;;  %6753 = vmatmul.mubr.msk.bf16.gmra.mrb[4].mxu0 %vm356_vm1, %v7151_v31  ;;  %v1037_v50 = vrot.slane %v1035_v42, 4  ;;  %v1043_v52 = vrot.slane %v1041_v12, 5  ;;  %v1048_v62 = vrot.slane %v1046_v46, 4  ;;  %v1445_v36 = vld [vmem:[%s7246_s26 + $0x30] sm:$0xe] }
  0x92   : > { %v1029_v56 = vrot.slane %v1028_v45, 4  ;;  %v1051_v13 = vrot.slane %v1049_v47, 5  ;;  %v1059_v18 = vshrl.u32 %v680_v14, 16  ;;  %6756 = vmatprep.mubr.msk.bf16.mxu0 %vm356_vm1, %v7152_v20  ;;  %v1057_v61 = vrot.slane %v1055_v33, 5  ;;  %v1446_v14 = vld [vmem:[%s7246_s26 + $0x34] sm:$0xf] }
  0x93   : > { %v1020_v59 = vsel %vm7278_vm4, %v1015_v49, %v1019_v30  ;;  %v1038_v60 = vor.u32 %v1037_v50, %v1033_v40  ;;  %v1065_v63 = vshll.u32 %v681_v43, 16  ;;  %v5837_v51 = vrot.slane %v1433_v11, 9  ;;  %v1447_v20 = vld [vmem:[%s7246_s26 + $0x38] sm:$0x1]  ;;  %v1448_v12 = vld [vmem:[%s7246_s26 + $0x3c] sm:$0xe] }
  0x94   : > { %v5817_v2 = vcombine.low %v1010_v44, %v1020_v59  ;;  %v1034_v5 = vsel %vm7278_vm4, %v1029_v56, %v1033_v40  ;;  %v1052_v7 = vor.u32 %v1051_v13, %v1048_v62  ;;  %v1061_v8 = vrot.slane %v1059_v18, 4  ;;  %v1449_v43 = vld [vmem:[%s7246_s26 + $0x40] sm:$0xf]  ;;  %v7155_v46 = vld [vmem:[%s7246_s26 + $0x6c] sm:$0xff]   ;;  %v7157_v33 = vld [vmem:[%s7246_s26 + $0x78] sm:$0xff]  }
  0x95   : > { %v1039_v15 = vrot.slane %v1038_v60, 4  ;;  %v1067_v41 = vrot.slane %v1065_v63, 5  ;;  %v1534_v57 = vrot.slane %v1434_v48, 5  ;;  %v1537_v4 = vrot.slane %v1435_v53, 5  ;;  %v1450_v53 = vld [vmem:[%s7246_s26 + $0x44] sm:$0x1] }
  0x96   : > { %6603 = vmatmul.mubr.msk.bf16.gmra.mrb[24].mxu1 %vm356_vm1, %v5817_v2  ;;  %v1053_v19 = vrot.slane %v1052_v7, 4  ;;  %v1062_v6 = vor.u32 %v1061_v8, %v1057_v61  ;;  %v5838_v10 = vrot.slane %v7686_v55, 9  ;;  %v1541_v27 = vrot.slane %v1437_v58, 5  ;;  %v1451_v55 = vld [vmem:[%s7246_s26 + $0x48] sm:$0xe] }
  0x97   : > { %v1044_v24 = vsel %vm7278_vm4, %v1039_v15, %v1043_v52  ;;  %v1535_v25 = vsel %vm7353_vm7, %v5837_v51, %v1534_v57  ;;  %v1536_v26 = vrot.slane %v1534_v57, 4  ;;  %v1544_v34 = vrot.slane %v1438_v0, 5  ;;  %v1452_v58 = vld [vmem:[%s7246_s26 + $0x4c] sm:$0xf]  ;;  %v1454_v63 = vld [vmem:[%s7246_s26 + $0x54] sm:$0xe] }
  0x98   : > { %v5818_v30 = vcombine.low %v1034_v5, %v1044_v24  ;;  %v1058_v31 = vsel %vm7278_vm4, %v1053_v19, %v1057_v61  ;;  %v1063_v32 = vrot.slane %v1062_v6, 4  ;;  %v1543_v38 = vrot.slane %v1541_v27, 4  ;;  %v1453_v61 = vld [vmem:[%s7246_s26 + $0x50] sm:$0x1]  ;;  %v1455_v8 = vld [vmem:[%s7246_s26 + $0x58] sm:$0xf] }
  0x99   : > { %6757 = vmatmul.mubr.msk.bf16.gmra.mrb[8].mxu0 %vm356_vm1, %v7153_v9  ;;  %v1538_v37 = vsel %vm7353_vm7, %v1536_v26, %v1537_v4  ;;  %v5839_v40 = vrot.slane %v1439_v16, 9  ;;  %v1548_v42 = vrot.slane %v1440_v17, 5  ;;  %v1551_v47 = vrot.slane %v1441_v23, 5  ;;  %v7158_v24 = vld [vmem:[%s7246_s26 + $0x84] sm:$0xff]  }
  0x9a   : > { %6606 = vmatprep.mubr.msk.bf16.mxu1 %vm356_vm1, %v5818_v30  ;;  %v1068_v21 = vsel %vm7278_vm4, %v1063_v32, %v1067_v41  ;;  %6760 = vmatprep.mubr.msk.bf16.mxu0 %vm356_vm1, %v7154_v22  ;;  %v5855_v45 = vcombine.low %v1535_v25, %v1538_v37  ;;  %v1555_v11 = vrot.slane %v1443_v29, 5  ;;  %v1542_v48 = vsel %vm7353_vm7, %v5838_v10, %v1541_v27  ;;  %v1458_v29 = vld [vmem:[%s7246_s26 + $0x64] sm:$0xf]  ;;  %v7159_v32 = vld [vmem:[%s7246_s26 + $0x90] sm:$0xff]   ;;  %v1460_v37 = vld [vmem:[%s7246_s26 + $0x6c] sm:$0xe] }
  0x9b   : > { %v5819_v44 = vcombine.low %v1058_v31, %v1068_v21  ;;  %v1545_v49 = vsel %vm7353_vm7, %v1543_v38, %v1544_v34  ;;  %v1550_v50 = vrot.slane %v1548_v42, 4  ;;  %v5840_v52 = vrot.slane %v1442_v28, 9  ;;  %v1457_v28 = vld [vmem:[%s7246_s26 + $0x60] sm:$0xe] }
  0x9c   : > { %v1557_v56 = vrot.slane %v1555_v11, 4  ;;  %v1558_v62 = vrot.slane %v1444_v35, 5  ;;  %v2210_v13 = vsel %vm405_vm0, %v7156_v1, 0  ;;  %v5841_v18 = vrot.slane %v1445_v36, 9  ;;  %v1456_v1 = vld [vmem:[%s7246_s26 + $0x5c] sm:$0x1] }
  0x9d   : > { %v1562_v59 = vrot.slane %v1446_v14, 5  ;;  %v1565_v60 = vrot.slane %v1447_v20, 5  ;;  %v1549_v0 = vsel %vm7353_vm7, %v5839_v40, %v1548_v42  ;;  %v1552_v2 = vsel %vm7353_vm7, %v1550_v50, %v1551_v47  ;;  %v1459_v35 = vld [vmem:[%s7246_s26 + $0x68] sm:$0x1]  ;;  %v1461_v40 = vld [vmem:[%s7246_s26 + $0x70] sm:$0xf] }
  0x9e   : > { %6607 = vmatmul.mubr.msk.bf16.gmra.mrb[28].mxu1 %vm356_vm1, %v5819_v44  ;;  %v5842_v5 = vrot.slane %v1448_v12, 9  ;;  %v1569_v7 = vrot.slane %v1449_v43, 5  ;;  %v5856_v9 = vcombine.low %v1542_v48, %v1545_v49  ;;  %v7749_v15 = vsel %vm7353_vm7, %v5840_v52, %v1555_v11  ;;  %v1462_v42 = vld [vmem:[%s7246_s26 + $0x74] sm:$0x1] }
  0x9f   : > { %6612 = vmatprep.mubr.msk.bf16.mxu1 %vm356_vm1, %v5855_v45  ;;  %v1564_v41 = vrot.slane %v1562_v59, 4  ;;  %v1572_v51 = vrot.slane %v1450_v53, 5  ;;  %v5843_v16 = vrot.slane %v1451_v55, 9  ;;  %v1576_v17 = vrot.slane %v1452_v58, 5  ;;  %v1463_v53 = vld [vmem:[%s7246_s26 + $0x78] sm:$0xe] }
  0xa0   : > { %v1571_v57 = vrot.slane %v1569_v7, 4  ;;  %v1579_v19 = vrot.slane %v1453_v61, 5  ;;  %v5857_v6 = vcombine.low %v1549_v0, %v1552_v2  ;;  %v5844_v4 = vrot.slane %v1454_v63, 9  ;;  %v1464_v55 = vld [vmem:[%s7246_s26 + $0x7c] sm:$0xf] }
  0xa1   : > { %6761 = vmatmul.mubr.msk.bf16.gmra.mrb[12].mxu0 %vm356_vm1, %v7155_v46  ;;  %v1583_v10 = vrot.slane %v1455_v8, 5  ;;  %v1586_v22 = vrot.slane %v1456_v1, 5  ;;  %v7755_v23 = vsel %vm7353_vm7, %v1557_v56, %v1558_v62  ;;  %v7760_v25 = vsel %vm7353_vm7, %v5841_v18, %v1562_v59  ;;  %v7182_v56 = vld [vmem:[%s8509_s1 + $0x20] sm:$0x3f]   ;;  %v1467_v2 = vld [vmem:[%s7246_s26 + $0x88] sm:$0xf] }
  0xa2   : > { %6764 = vmatprep.mubr.msk.bf16.mxu0 %vm356_vm1, %v7157_v33  ;;  %v7764_v26 = vsel %vm7353_vm7, %v5842_v5, %v1569_v7  ;;  %v1578_v27 = vrot.slane %v1576_v17, 4  ;;  %v7770_v30 = vsel %vm7353_vm7, %v1564_v41, %v1565_v60  ;;  %v7774_v31 = vsel %vm7353_vm7, %v1571_v57, %v1572_v51  ;;  %v1465_v18 = vld [vmem:[%s7246_s26 + $0x80] sm:$0x1]  ;;  %v1466_v60 = vld [vmem:[%s7246_s26 + $0x84] sm:$0xe] }
  0xa3   : > { %v1585_v34 = vrot.slane %v1583_v10, 4  ;;  %v5845_v36 = vrot.slane %v1457_v28, 9  ;;  %v7781_v38 = vsel %vm7353_vm7, %v5843_v16, %v1576_v17  ;;  %v1590_v20 = vrot.slane %v1458_v29, 5  ;;  %v1468_v5 = vld [vmem:[%s7246_s26 + $0x8c] sm:$0x1]  ;;  %v7160_v8 = vld [vmem:[%s7246_s26 + $0x9c] sm:$0xff]  }
  0xa4   : > { %v7785_v14 = vsel %vm7353_vm7, %v1578_v27, %v1579_v19  ;;  %v1593_v21 = vrot.slane %v1459_v35, 5  ;;  %v7792_v12 = vsel %vm7353_vm7, %v5844_v4, %v1583_v10  ;;  %v5846_v44 = vrot.slane %v1460_v37, 9  ;;  %v6204_v51 = vld [vmem:[%s7246_s26 + $0x18] sm:$0xf]  ;;  %v6205_v57 = vld [vmem:[%s7246_s26 + $0x1c] sm:$0xf] }
  0xa5   : > { %v7796_v43 = vsel %vm7353_vm7, %v1585_v34, %v1586_v22  ;;  %v1597_v45 = vrot.slane %v1461_v40, 5  ;;  %v5858_v46 = vcombine.low %v7749_v15, %v7755_v23  ;;  %v7803_v47 = vsel %vm7353_vm7, %v5845_v36, %v1590_v20  ;;  %v6206_v17 = vld [vmem:[%s7246_s26 + $0x20] sm:$0x1] }
  0xa6   : > { %6613 = vmatmul.mubr.msk.bf16.vlgmr.msra.gmra.mrb[0].mxu1 %vm356_vm1, %v5856_v9  ;;  %v1592_v11 = vrot.slane %v1590_v20, 4  ;;  %v1600_v48 = vrot.slane %v1462_v42, 5  ;;  %v5859_v49 = vcombine.low %v7760_v25, %v7770_v30  ;;  %v5860_v50 = vcombine.low %v7764_v26, %v7774_v31  ;;  %v7161_v25 = vld [vmem:[%s7246_s26 + $0xa8] sm:$0xff]   ;;  %v6207_v20 = vld [vmem:[%s7246_s26 + $0x24] sm:$0xf] }
  0xa7   : > { %6616 = vmatprep.mubr.msk.bf16.mxu1 %vm356_vm1, %v5857_v6  ;;  %6645 = vmatpush3.bf16.msra.mxu1 %v2210_v13  ;;  %v5861_v52 = vcombine.low %v7781_v38, %v7785_v14  ;;  %v1599_v33 = vrot.slane %v1597_v45, 4  ;;  %v5862_v62 = vcombine.low %v7792_v12, %v7796_v43  ;;  %v5847_v58 = vrot.slane %v1463_v53, 9  ;;  %v6212_v14 = vld [vmem:[%s7246_s26 + $0x38] sm:$0x1] }
  0xa8   : > { %7111 = vmatprep.subr.msk.bf16.mxu1 %vm405_vm0, %v7182_v56  ;;  %v7822_v13 = vsel %vm7353_vm7, %v1592_v11, %v1593_v21  ;;  %v1604_v59 = vrot.slane %v1464_v55, 5  ;;  %v7831_v63 = vsel %vm7353_vm7, %v5846_v44, %v1597_v45  ;;  %v1607_v0 = vrot.slane %v1465_v18, 5  ;;  %v6208_v21 = vld [vmem:[%s7246_s26 + $0x28] sm:$0xf]  ;;  %v6209_v44 = vld [vmem:[%s7246_s26 + $0x2c] sm:$0x1] }
  0xa9   : > { %6765 = vmatmul.mubr.msk.bf16.gmra.mrb[16].mxu0 %vm356_vm1, %v7158_v24  ;;  %v5863_v61 = vcombine.low %v7803_v47, %v7822_v13  ;;  %v5848_v7 = vrot.slane %v1466_v60, 9  ;;  %v7838_v1 = vsel %vm7353_vm7, %v1599_v33, %v1600_v48  ;;  %v1611_v41 = vrot.slane %v1467_v2, 5  ;;  %v1469_v11 = vld [vmem:[%s7246_s26 + $0x90] sm:$0xe]  ;;  %v1470_v55 = vld [vmem:[%s7246_s26 + $0x94] sm:$0xf] }
  0xaa   : > { %6768 = vmatprep.mubr.msk.bf16.mxu0 %vm356_vm1, %v7159_v32  ;;  %v7842_v9 = vsel %vm7353_vm7, %v5847_v58, %v1604_v59  ;;  %v1606_v15 = vrot.slane %v1604_v59, 4  ;;  %v1614_v16 = vrot.slane %v1468_v5, 5  ;;  %v4283_v19 = vshrl.u32 %v6204_v51, 16  ;;  %v7165_v32 = vld [vmem:[%s8509_s1 + $0x40] sm:$0x3f]  }
  0xab   : > { %v4286_v6 = vshll.u32 %v6204_v51, 16  ;;  %v4292_v4 = vshll.u32 %v6205_v57, 16  ;;  %v7853_v22 = vsel %vm7353_vm7, %v5848_v7, %v1611_v41  ;;  %v1613_v23 = vrot.slane %v1611_v41, 4  ;;  %7115 = vmatprep.subr.msk.bf16.mxu0 %vm405_vm0, %v7165_v32  ;;  %v1471_v60 = vld [vmem:[%s7246_s26 + $0x98] sm:$0x1] }
  0xac   : > { %v7849_v10 = vsel %vm7353_vm7, %v1606_v15, %v1607_v0  ;;  %v4296_v24 = vshrl.u32 %v6205_v57, 16  ;;  %v5864_v27 = vcombine.low %v7831_v63, %v7838_v1  ;;  %v4285_v28 = vrot.slane %v4283_v19, 4  ;;  %v7162_v19 = vld [vmem:[%s7246_s26 + $0xb4] sm:$0xff]   ;;  %v6222_v1 = vld [vmem:[%s7246_s26 + $0x60] sm:$0xf] }
  0xad   : > { %v4288_v29 = vrot.slane %v4286_v6, 5  ;;  %v4294_v30 = vrot.slane %v4292_v4, 5  ;;  %v5865_v34 = vcombine.low %v7842_v9, %v7849_v10  ;;  %v7867_v35 = vsel %vm7353_vm7, %v1613_v23, %v1614_v16  ;;  %v1473_v16 = vld [vmem:[%s7246_s26 + $0xa0] sm:$0xf] }
  0xae   : > { %6617 = vmatmul.mubr.msk.bf16.gmra.mrb[4].mxu1 %vm356_vm1, %v5858_v46  ;;  %v4298_v36 = vrot.slane %v4296_v24, 4  ;;  %v4302_v37 = vshll.u32 %v6206_v17, 16  ;;  %v5866_v40 = vcombine.low %v7853_v22, %v7867_v35  ;;  %v4307_v45 = vshrl.u32 %v6207_v20, 16  ;;  %v1474_v17 = vld [vmem:[%s7246_s26 + $0xa4] sm:$0x1] }
  0xaf   : > { %6620 = vmatprep.mubr.msk.bf16.mxu1 %vm356_vm1, %v5859_v49  ;;  %v4289_v42 = vor.u32 %v4288_v29, %v4285_v28  ;;  %v4310_v46 = vshll.u32 %v6207_v20, 16  ;;  %v4316_v33 = vshll.u32 %v6208_v21, 16  ;;  %v4320_v53 = vshrl.u32 %v6208_v21, 16  ;;  %v7163_v28 = vld [vmem:[%s7246_s26 + $0xc0] sm:$0xff]  }
  0xb0   : > { %v4299_v48 = vor.u32 %v4298_v36, %v4294_v30  ;;  %v4304_v49 = vrot.slane %v4302_v37, 5  ;;  %v4309_v18 = vrot.slane %v4307_v45, 4  ;;  %v4326_v59 = vshll.u32 %v6209_v44, 16  ;;  %v6211_v37 = vld [vmem:[%s7246_s26 + $0x34] sm:$0xf] }
  0xb1   : > { %6769 = vmatmul.mubr.msk.bf16.gmra.mrb[20].mxu0 %vm356_vm1, %v7160_v8  ;;  %v4290_v56 = vrot.slane %v4289_v42, 4  ;;  %v4312_v58 = vrot.slane %v4310_v46, 5  ;;  %v4318_v2 = vrot.slane %v4316_v33, 5  ;;  %v4322_v5 = vrot.slane %v4320_v53, 4  ;;  %v1472_v8 = vld [vmem:[%s7246_s26 + $0x9c] sm:$0xe] }
  0xb2   : > { %6772 = vmatprep.mubr.msk.bf16.mxu0 %vm356_vm1, %v7161_v25  ;;  %v4300_v0 = vrot.slane %v4299_v48, 4  ;;  %v7881_v7 = vsel %vm405_vm0, %v7165_v32, 0  ;;  %v4328_v51 = vrot.slane %v4326_v59, 5  ;;  %v5849_v57 = vrot.slane %v1469_v11, 9  ;;  %v6210_v25 = vld [vmem:[%s7246_s26 + $0x30] sm:$0xf] }
  0xb3   : > { %v4295_v15 = vsel %vm7278_vm4, %v4290_v56, %v4294_v30  ;;  %v4313_v41 = vor.u32 %v4312_v58, %v4309_v18  ;;  %v4323_v4 = vor.u32 %v4322_v5, %v4318_v2  ;;  %v1618_v23 = vrot.slane %v1470_v55, 5  ;;  %v6213_v48 = vld [vmem:[%s7246_s26 + $0x3c] sm:$0xf]  ;;  %v6215_v18 = vld [vmem:[%s7246_s26 + $0x44] sm:$0x1] }
  0xb4   : > { %v4305_v6 = vsel %vm7278_vm4, %v4300_v0, %v4304_v49  ;;  %v1621_v24 = vrot.slane %v1471_v60, 5  ;;  %v5850_v32 = vrot.slane %v1472_v8, 9  ;;  %v1625_v36 = vrot.slane %v1473_v16, 5  ;;  %v6214_v49 = vld [vmem:[%s7246_s26 + $0x40] sm:$0xf]  ;;  %v7164_v16 = vld [vmem:[%s7246_s26 + $0xcc] sm:$0xff]  }
  0xb5   : > { %v7897_v29 = vcombine.low %v4295_v15, %v4305_v6  ;;  %v4314_v30 = vrot.slane %v4313_v41, 4  ;;  %v4324_v20 = vrot.slane %v4323_v4, 4  ;;  %v7906_v26 = vsel %vm7353_vm7, %v5849_v57, %v1618_v23  ;;  %v1476_v5 = vld [vmem:[%s7246_s26 + $0xac] sm:$0xf]  ;;  %v1477_v57 = vld [vmem:[%s7246_s26 + $0xb0] sm:$0x1] }
  0xb6   : > { %6621 = vmatmul.mubr.msk.bf16.gmra.mrb[8].mxu1 %vm356_vm1, %v5860_v50  ;;  %v1620_v31 = vrot.slane %v1618_v23, 4  ;;  %v1628_v50 = vrot.slane %v1474_v17, 5  ;;  %v7912_v42 = vsel %vm7353_vm7, %v5850_v32, %v1625_v36  ;;  %v1627_v38 = vrot.slane %v1625_v36, 4  ;;  %v1478_v23 = vld [vmem:[%s7246_s26 + $0xb4] sm:$0xe] }
  0xb7   : > { %6624 = vmatprep.mubr.msk.bf16.mxu1 %vm356_vm1, %v5861_v52  ;;  %v4319_v21 = vsel %vm7278_vm4, %v4314_v30, %v4318_v2  ;;  %v4331_v44 = vshrl.u32 %v6210_v25, 16  ;;  %v4329_v52 = vsel %vm7278_vm4, %v4324_v20, %v4328_v51  ;;  %v4334_v46 = vshll.u32 %v6210_v25, 16  ;;  %v1475_v2 = vld [vmem:[%s7246_s26 + $0xa8] sm:$0xe]  ;;  %v1479_v32 = vld [vmem:[%s7246_s26 + $0xb8] sm:$0xf] }
  0xb8   : > { %v7920_v45 = vsel %vm7353_vm7, %v1620_v31, %v1621_v24  ;;  %v4340_v11 = vshll.u32 %v6211_v37, 16  ;;  %v7925_v33 = vcombine.low %v4319_v21, %v4329_v52  ;;  %v7931_v55 = vsel %vm7353_vm7, %v1627_v38, %v1628_v50  ;;  %v1480_v50 = vld [vmem:[%s7246_s26 + $0xbc] sm:$0x1]  ;;  %v6216_v38 = vld [vmem:[%s7246_s26 + $0x48] sm:$0xf] }
  0xb9   : > { %6773 = vmatmul.mubr.msk.bf16.gmra.mrb[24].mxu0 %vm356_vm1, %v7162_v19  ;;  %v5867_v53 = vcombine.low %v7906_v26, %v7920_v45  ;;  %v4333_v56 = vrot.slane %v4331_v44, 4  ;;  %v5868_v58 = vcombine.low %v7912_v42, %v7931_v55  ;;  %v4336_v59 = vrot.slane %v4334_v46, 5  ;;  %v6217_v44 = vld [vmem:[%s7246_s26 + $0x4c] sm:$0xf]  ;;  %v6234_v42 = vld [vmem:[%s7246_s26 + $0x90] sm:$0xf] }
  0xba   : > { %6776 = vmatprep.mubr.msk.bf16.mxu0 %vm356_vm1, %v7163_v28  ;;  %v4342_v60 = vrot.slane %v4340_v11, 5  ;;  %v4344_v0 = vshrl.u32 %v6211_v37, 16  ;;  %v4350_v8 = vshll.u32 %v6212_v14, 16  ;;  %v4355_v15 = vshrl.u32 %v6213_v48, 16 }
  0xbb   : > { %v4358_v41 = vshll.u32 %v6213_v48, 16  ;;  %v4364_v51 = vshll.u32 %v6214_v49, 16  ;;  %v4337_v17 = vor.u32 %v4336_v59, %v4333_v56  ;;  %v4368_v6 = vshrl.u32 %v6214_v49, 16  ;;  %v6218_v49 = vld [vmem:[%s7246_s26 + $0x50] sm:$0x1] }
  0xbc   : > { %v4346_v19 = vrot.slane %v4344_v0, 4  ;;  %v4374_v4 = vshll.u32 %v6215_v18, 16  ;;  %v4352_v24 = vrot.slane %v4350_v8, 5  ;;  %v4357_v25 = vrot.slane %v4355_v15, 4  ;;  %v6219_v8 = vld [vmem:[%s7246_s26 + $0x54] sm:$0xf] }
  0xbd   : > { %v4360_v28 = vrot.slane %v4358_v41, 5  ;;  %v4366_v30 = vrot.slane %v4364_v51, 5  ;;  %v4338_v36 = vrot.slane %v4337_v17, 4  ;;  %v4370_v20 = vrot.slane %v4368_v6, 4 }
  0xbe   : > { %6625 = vmatmul.mubr.msk.bf16.gmra.mrb[12].mxu1 %vm356_vm1, %v5862_v62  ;;  %v4347_v37 = vor.u32 %v4346_v19, %v4342_v60  ;;  %v4376_v31 = vrot.slane %v4374_v4, 5  ;;  %v5851_v43 = vrot.slane %v1475_v2, 9  ;;  %v1632_v62 = vrot.slane %v1476_v5, 5 }
  0xbf   : > { %6628 = vmatprep.mubr.msk.bf16.mxu1 %vm356_vm1, %v5863_v61  ;;  %v4361_v12 = vor.u32 %v4360_v28, %v4357_v25  ;;  %v1635_v21 = vrot.slane %v1477_v57, 5  ;;  %v4343_v14 = vsel %vm7278_vm4, %v4338_v36, %v4342_v60  ;;  %v4371_v13 = vor.u32 %v4370_v20, %v4366_v30 }
  0xc0   : > { %v4348_v47 = vrot.slane %v4347_v37, 4  ;;  %v5852_v61 = vrot.slane %v1478_v23, 9  ;;  %v7960_v46 = vsel %vm7353_vm7, %v5851_v43, %v1632_v62  ;;  %v1634_v11 = vrot.slane %v1632_v62, 4  ;;  %v6221_v23 = vld [vmem:[%s7246_s26 + $0x5c] sm:$0x1] }
  0xc1   : > { %6777 = vmatmul.mubr.msk.bf16.gmra.mrb[28].mxu0 %vm356_vm1, %v7164_v16  ;;  %v4362_v52 = vrot.slane %v4361_v12, 4  ;;  %v1639_v48 = vrot.slane %v1479_v32, 5  ;;  %v4372_v18 = vrot.slane %v4371_v13, 4  ;;  %v1642_v59 = vrot.slane %v1480_v50, 5  ;;  %v6220_v16 = vld [vmem:[%s7246_s26 + $0x58] sm:$0xf] }
  0xc2   : > { %6782 = vmatprep.mubr.msk.bf16.mxu0 %vm356_vm1, %v7897_v29  ;;  %v4353_v56 = vsel %vm7278_vm4, %v4348_v47, %v4352_v24  ;;  %v4379_v60 = vshrl.u32 %v6216_v38, 16  ;;  %v7969_v2 = vsel %vm7353_vm7, %v1634_v11, %v1635_v21  ;;  %v4382_v19 = vshll.u32 %v6216_v38, 16  ;;  %v6223_v37 = vld [vmem:[%s7246_s26 + $0x64] sm:$0xf] }
  0xc3   : > { %v6256_v0 = vcombine.low %v4343_v14, %v4353_v56  ;;  %v4367_v29 = vsel %vm7278_vm4, %v4362_v52, %v4366_v30  ;;  %v7973_v5 = vsel %vm7353_vm7, %v5852_v61, %v1639_v48  ;;  %v4377_v15 = vsel %vm7278_vm4, %v4372_v18, %v4376_v31 }
  0xc4   : > { %v5869_v41 = vcombine.low %v7960_v46, %v7969_v2  ;;  %v1641_v51 = vrot.slane %v1639_v48, 4  ;;  %v4381_v57 = vrot.slane %v4379_v60, 4  ;;  %v6257_v17 = vcombine.low %v4367_v29, %v4377_v15  ;;  %v6228_v15 = vld [vmem:[%s7246_s26 + $0x78] sm:$0xf] }
  0xc5   : > { %v4388_v6 = vshll.u32 %v6217_v44, 16  ;;  %v4392_v4 = vshrl.u32 %v6217_v44, 16  ;;  %v4398_v25 = vshll.u32 %v6218_v49, 16  ;;  %v4403_v28 = vshrl.u32 %v6219_v8, 16  ;;  %v6224_v44 = vld [vmem:[%s7246_s26 + $0x68] sm:$0x1] }
  0xc6   : > { %6629 = vmatmul.mubr.msk.bf16.gmra.mrb[16].mxu1 %vm356_vm1, %v5864_v27  ;;  %v7992_v24 = vsel %vm7353_vm7, %v1641_v51, %v1642_v59  ;;  %v4406_v63 = vshll.u32 %v6219_v8, 16  ;;  %v4384_v30 = vrot.slane %v4382_v19, 5  ;;  %v4412_v20 = vshll.u32 %v6220_v16, 16  ;;  %v6225_v49 = vld [vmem:[%s7246_s26 + $0x6c] sm:$0xf] }
  0xc7   : > { %6632 = vmatprep.mubr.msk.bf16.mxu1 %vm356_vm1, %v5865_v34  ;;  %v5870_v27 = vcombine.low %v7973_v5, %v7992_v24  ;;  %v4390_v32 = vrot.slane %v4388_v6, 5  ;;  %v4394_v36 = vrot.slane %v4392_v4, 4  ;;  %v4400_v9 = vrot.slane %v4398_v25, 5  ;;  %v6227_v8 = vld [vmem:[%s7246_s26 + $0x74] sm:$0x1] }
  0xc8   : > { %v4405_v10 = vrot.slane %v4403_v28, 4  ;;  %v4408_v34 = vrot.slane %v4406_v63, 5  ;;  %v4385_v31 = vor.u32 %v4384_v30, %v4381_v57  ;;  %v4416_v12 = vshrl.u32 %v6220_v16, 16  ;;  %v6229_v6 = vld [vmem:[%s7246_s26 + $0x7c] sm:$0xf] }
  0xc9   : > { %6783 = vmatmul.mubr.msk.bf16.vlgmr.msra.gmra.mrb[0].mxu0 %vm356_vm1, %v7925_v33  ;;  %v4395_v50 = vor.u32 %v4394_v36, %v4390_v32  ;;  %v4422_v43 = vshll.u32 %v6221_v23, 16  ;;  %v4414_v21 = vrot.slane %v4412_v20, 5  ;;  %v4427_v38 = vshrl.u32 %v6222_v1, 16 }
  0xca   : > { %6815 = vmatpush3.bf16.msra.mxu0 %v7881_v7  ;;  %6786 = vmatprep.mubr.msk.bf16.mxu0 %vm356_vm1, %v6256_v0  ;;  %v4409_v62 = vor.u32 %v4408_v34, %v4405_v10  ;;  %v4430_v14 = vshll.u32 %v6222_v1, 16  ;;  %v4386_v33 = vrot.slane %v4385_v31, 4  ;;  %v4418_v13 = vrot.slane %v4416_v12, 4  ;;  %v6226_v0 = vld [vmem:[%s7246_s26 + $0x70] sm:$0xf] }
  0xcb   : > { %v4396_v47 = vrot.slane %v4395_v50, 4  ;;  %v4424_v61 = vrot.slane %v4422_v43, 5  ;;  %v4429_v7 = vrot.slane %v4427_v38, 4  ;;  %v4436_v48 = vshll.u32 %v6223_v37, 16  ;;  %v6230_v10 = vld [vmem:[%s7246_s26 + $0x80] sm:$0x1] }
  0xcc   : > { %v4410_v52 = vrot.slane %v4409_v62, 4  ;;  %v4432_v11 = vrot.slane %v4430_v14, 5  ;;  %v4391_v56 = vsel %vm7278_vm4, %v4386_v33, %v4390_v32  ;;  %v4419_v59 = vor.u32 %v4418_v13, %v4414_v21  ;;  %v6231_v43 = vld [vmem:[%s7246_s26 + $0x84] sm:$0xf]  ;;  %v6232_v33 = vld [vmem:[%s7246_s26 + $0x88] sm:$0xf] }
  0xcd   : > { %v4401_v18 = vsel %vm7278_vm4, %v4396_v47, %v4400_v9  ;;  %v4440_v60 = vshrl.u32 %v6223_v37, 16  ;;  %v4446_v16 = vshll.u32 %v6224_v44, 16  ;;  %v4451_v19 = vshrl.u32 %v6225_v49, 16 }
  0xce   : > { %6633 = vmatmul.mubr.msk.bf16.gmra.mrb[20].mxu1 %vm356_vm1, %v5866_v40  ;;  %v6258_v29 = vcombine.low %v4391_v56, %v4401_v18  ;;  %v4415_v22 = vsel %vm7278_vm4, %v4410_v52, %v4414_v21  ;;  %v4433_v35 = vor.u32 %v4432_v11, %v4429_v7  ;;  %v4438_v40 = vrot.slane %v4436_v48, 5  ;;  %v6233_v52 = vld [vmem:[%s7246_s26 + $0x8c] sm:$0x1] }
  0xcf   : > { %6636 = vmatprep.mubr.msk.bf16.mxu1 %vm356_vm1, %v5867_v53  ;;  %v4420_v51 = vrot.slane %v4419_v59, 4  ;;  %v4442_v57 = vrot.slane %v4440_v60, 4  ;;  %v4454_v26 = vshll.u32 %v6225_v49, 16  ;;  %v4460_v45 = vshll.u32 %v6226_v0, 16  ;;  %v6235_v60 = vld [vmem:[%s7246_s26 + $0x94] sm:$0xf] }
  0xd0   : > { %v4434_v4 = vrot.slane %v4433_v35, 4  ;;  %v4464_v53 = vshrl.u32 %v6226_v0, 16  ;;  %v4448_v28 = vrot.slane %v4446_v16, 5  ;;  %v4453_v63 = vrot.slane %v4451_v19, 4  ;;  %v7166_v0 = vld [vmem:[%s7246_s26 + $0xc] sm:$0xff]  }
  0xd1   : > { %6787 = vmatmul.mubr.msk.bf16.gmra.mrb[4].mxu0 %vm356_vm1, %v6257_v17  ;;  %v4425_v23 = vsel %vm7278_vm4, %v4420_v51, %v4424_v61  ;;  %v4443_v25 = vor.u32 %v4442_v57, %v4438_v40  ;;  %v4456_v32 = vrot.slane %v4454_v26, 5  ;;  %v4462_v17 = vrot.slane %v4460_v45, 5  ;;  %v6236_v57 = vld [vmem:[%s7246_s26 + $0x98] sm:$0x1]  ;;  %v6237_v45 = vld [vmem:[%s7246_s26 + $0x9c] sm:$0xf] }
  0xd2   : > { %6790 = vmatprep.mubr.msk.bf16.mxu0 %vm356_vm1, %v6258_v29  ;;  %v6259_v1 = vcombine.low %v4415_v22, %v4425_v23  ;;  %v4439_v30 = vsel %vm7278_vm4, %v4434_v4, %v4438_v40  ;;  %v4466_v37 = vrot.slane %v4464_v53, 4  ;;  %v4470_v9 = vshll.u32 %v6227_v8, 16  ;;  %v6238_v53 = vld [vmem:[%s7246_s26 + $0xa0] sm:$0xf] }
  0xd3   : > { %v4444_v36 = vrot.slane %v4443_v25, 4  ;;  %v4475_v34 = vshrl.u32 %v6228_v15, 16  ;;  %v4457_v20 = vor.u32 %v4456_v32, %v4453_v63  ;;  %v4478_v31 = vshll.u32 %v6228_v15, 16 }
  0xd4   : > { %v4484_v50 = vshll.u32 %v6229_v6, 16  ;;  %v4488_v12 = vshrl.u32 %v6229_v6, 16  ;;  %v4467_v21 = vor.u32 %v4466_v37, %v4462_v17  ;;  %v4472_v38 = vrot.slane %v4470_v9, 5 }
  0xd5   : > { %v4449_v62 = vsel %vm7278_vm4, %v4444_v36, %v4448_v28  ;;  %v4477_v14 = vrot.slane %v4475_v34, 4  ;;  %v4458_v13 = vrot.slane %v4457_v20, 4  ;;  %v4480_v61 = vrot.slane %v4478_v31, 5  ;;  %v6239_v36 = vld [vmem:[%s7246_s26 + $0xa4] sm:$0x1] }
  0xd6   : > { %6637 = vmatmul.mubr.msk.bf16.gmra.mrb[24].mxu1 %vm356_vm1, %v5868_v58  ;;  %v6260_v47 = vcombine.low %v4439_v30, %v4449_v62  ;;  %v4486_v44 = vrot.slane %v4484_v50, 5  ;;  %v4468_v55 = vrot.slane %v4467_v21, 4  ;;  %v4490_v58 = vrot.slane %v4488_v12, 4  ;;  %v6240_v31 = vld [vmem:[%s7246_s26 + $0xa8] sm:$0xf]  ;;  %v7167_v50 = vld [vmem:[%s7246_s26 + $0x18] sm:$0xff]  }
  0xd7   : > { %6640 = vmatprep.mubr.msk.bf16.mxu1 %vm356_vm1, %v5869_v41  ;;  %v4494_v7 = vshll.u32 %v6230_v10, 16  ;;  %v4499_v11 = vshrl.u32 %v6231_v43, 16  ;;  %v4463_v48 = vsel %vm7278_vm4, %v4458_v13, %v4462_v17  ;;  %v4481_v46 = vor.u32 %v4480_v61, %v4477_v14 }
  0xd8   : > { %v4502_v2 = vshll.u32 %v6231_v43, 16  ;;  %v4508_v41 = vshll.u32 %v6232_v33, 16  ;;  %v4473_v49 = vsel %vm7278_vm4, %v4468_v55, %v4472_v38  ;;  %v4491_v56 = vor.u32 %v4490_v58, %v4486_v44  ;;  %v7168_v38 = vld [vmem:[%s7246_s26 + $0x24] sm:$0xff]   ;;  %v6242_v55 = vld [vmem:[%s7246_s26 + $0xb0] sm:$0x1] }
  0xd9   : > { %6791 = vmatmul.mubr.msk.bf16.gmra.mrb[8].mxu0 %vm356_vm1, %v6259_v1  ;;  %v4496_v18 = vrot.slane %v4494_v7, 5  ;;  %v4501_v59 = vrot.slane %v4499_v11, 4  ;;  %v6261_v29 = vcombine.low %v4463_v48, %v4473_v49  ;;  %v4482_v22 = vrot.slane %v4481_v46, 4 }
  0xda   : > { %6794 = vmatprep.mubr.msk.bf16.mxu0 %vm356_vm1, %v6260_v47  ;;  %v4504_v35 = vrot.slane %v4502_v2, 5  ;;  %v4510_v40 = vrot.slane %v4508_v41, 5  ;;  %v4492_v8 = vrot.slane %v4491_v56, 4  ;;  %v4512_v15 = vshrl.u32 %v6232_v33, 16  ;;  %v6243_v2 = vld [vmem:[%s7246_s26 + $0xb4] sm:$0xf] }
  0xdb   : > { %v4518_v51 = vshll.u32 %v6233_v52, 16  ;;  %v4523_v16 = vshrl.u32 %v6234_v42, 16  ;;  %v4487_v19 = vsel %vm7278_vm4, %v4482_v22, %v4486_v44  ;;  %v4526_v4 = vshll.u32 %v6234_v42, 16  ;;  %v6241_v42 = vld [vmem:[%s7246_s26 + $0xac] sm:$0xf] }
  0xdc   : > { %v4505_v6 = vor.u32 %v4504_v35, %v4501_v59  ;;  %v4532_v26 = vshll.u32 %v6235_v60, 16  ;;  %v4497_v23 = vsel %vm7278_vm4, %v4492_v8, %v4496_v18  ;;  %v4514_v25 = vrot.slane %v4512_v15, 4  ;;  %v6244_v59 = vld [vmem:[%s7246_s26 + $0xb8] sm:$0xf] }
  0xdd   : > { %v4520_v28 = vrot.slane %v4518_v51, 5  ;;  %v4525_v63 = vrot.slane %v4523_v16, 4  ;;  %v6262_v1 = vcombine.low %v4487_v19, %v4497_v23  ;;  %v4528_v32 = vrot.slane %v4526_v4, 5  ;;  %v6245_v19 = vld [vmem:[%s7246_s26 + $0xbc] sm:$0x1] }
  0xde   : > { %6641 = vmatmul.mubr.msk.bf16.gmra.mrb[28].mxu1 %vm356_vm1, %v5870_v27  ;;  %v4506_v30 = vrot.slane %v4505_v6, 4  ;;  %v4534_v17 = vrot.slane %v4532_v26, 5  ;;  %v4515_v37 = vor.u32 %v4514_v25, %v4510_v40  ;;  %v4536_v5 = vshrl.u32 %v6235_v60, 16  ;;  %v7169_v6 = vld [vmem:[%s7246_s26 + $0x30] sm:$0xff]   ;;  %v6246_v23 = vld [vmem:[%s7246_s26 + $0xc0] sm:$0xf] }
  0xdf   : > { %6646 = vmatprep.mubr.msk.bf16.mxu1 %vm356_vm1, %v7166_v0  ;;  %v4542_v24 = vshll.u32 %v6236_v57, 16  ;;  %v4547_v27 = vshrl.u32 %v6237_v45, 16  ;;  %v4529_v10 = vor.u32 %v4528_v32, %v4525_v63  ;;  %v4550_v34 = vshll.u32 %v6237_v45, 16  ;;  %v7170_v25 = vld [vmem:[%s7246_s26 + $0x3c] sm:$0xff]  }
  0xe0   : > { %v4511_v9 = vsel %vm7278_vm4, %v4506_v30, %v4510_v40  ;;  %v4556_v20 = vshll.u32 %v6238_v53, 16  ;;  %v4516_v12 = vrot.slane %v4515_v37, 4  ;;  %v4538_v43 = vrot.slane %v4536_v5, 4  ;;  %v6247_v5 = vld [vmem:[%s7246_s26 + $0xc4] sm:$0xf] }
  0xe1   : > { %6795 = vmatmul.mubr.msk.bf16.gmra.mrb[12].mxu0 %vm356_vm1, %v6261_v29  ;;  %v4544_v62 = vrot.slane %v4542_v24, 5  ;;  %v4549_v21 = vrot.slane %v4547_v27, 4  ;;  %v4530_v14 = vrot.slane %v4529_v10, 4  ;;  %v4552_v33 = vrot.slane %v4550_v34, 5  ;;  %v6248_v24 = vld [vmem:[%s7246_s26 + $0xc8] sm:$0x1] }
  0xe2   : > { %6798 = vmatprep.mubr.msk.bf16.mxu0 %vm356_vm1, %v6262_v1  ;;  %v4558_v47 = vrot.slane %v4556_v20, 5  ;;  %v4560_v13 = vshrl.u32 %v6238_v53, 16  ;;  %v4521_v61 = vsel %vm7278_vm4, %v4516_v12, %v4520_v28  ;;  %v4539_v44 = vor.u32 %v4538_v43, %v4534_v17  ;;  %v6249_v20 = vld [vmem:[%s7246_s26 + $0xcc] sm:$0xf] }
  0xe3   : > { %v4566_v52 = vshll.u32 %v6239_v36, 16  ;;  %v4571_v58 = vshrl.u32 %v6240_v31, 16  ;;  %v6263_v7 = vcombine.low %v4511_v9, %v4521_v61  ;;  %v4535_v11 = vsel %vm7278_vm4, %v4530_v14, %v4534_v17 }
  0xe4   : > { %v4553_v48 = vor.u32 %v4552_v33, %v4549_v21  ;;  %v4562_v46 = vrot.slane %v4560_v13, 4  ;;  %v4540_v41 = vrot.slane %v4539_v44, 4  ;;  %v4574_v18 = vshll.u32 %v6240_v31, 16 }
  0xe5   : > { %v4568_v49 = vrot.slane %v4566_v52, 5  ;;  %v4573_v56 = vrot.slane %v4571_v58, 4  ;;  %v4580_v29 = vshll.u32 %v6241_v42, 16  ;;  %v4584_v22 = vshrl.u32 %v6241_v42, 16  ;;  %v6251_v52 = vld [vmem:[%s7246_s26 + $0xd4] sm:$0x1] }
  0xe6   : > { %6647 = vmatmul.mubr.msk.bf16.vlgmr.msra.gmra.mrb[0].mxu1 %vm356_vm1, %v7167_v50  ;;  %v4554_v60 = vrot.slane %v4553_v48, 4  ;;  %v4563_v0 = vor.u32 %v4562_v46, %v4558_v47  ;;  %v4545_v35 = vsel %vm7278_vm4, %v4540_v41, %v4544_v62  ;;  %v4576_v40 = vrot.slane %v4574_v18, 5  ;;  %v6250_v62 = vld [vmem:[%s7246_s26 + $0xd0] sm:$0xf]  ;;  %v7171_v42 = vld [vmem:[%s7246_s26 + $0x48] sm:$0xff]   ;;  %v7172_v46 = vld [vmem:[%s7246_s26 + $0x54] sm:$0xff]  }
  0xe7   : > { %6650 = vmatprep.mubr.msk.bf16.mxu1 %vm356_vm1, %v7168_v38  ;;  %6849 = vmatpush3.bf16.msra.mxu1 %v7233_v3  ;;  %v4590_v8 = vshll.u32 %v6242_v55, 16  ;;  %v4595_v15 = vshrl.u32 %v6243_v2, 16  ;;  %v6264_v51 = vcombine.low %v4535_v11, %v4545_v35  ;;  %v4582_v3 = vrot.slane %v4580_v29, 5  ;;  %v6287_v48 = vld [vmem:[%s7246_s26 + $0x18] sm:$0xe] }
  0xe8   : > { %v4559_v57 = vsel %vm7278_vm4, %v4554_v60, %v4558_v47  ;;  %v4564_v16 = vrot.slane %v4563_v0, 4  ;;  %v4577_v4 = vor.u32 %v4576_v40, %v4573_v56  ;;  %v4586_v26 = vrot.slane %v4584_v22, 4  ;;  %v6288_v18 = vld [vmem:[%s7246_s26 + $0x1c] sm:$0xf]  ;;  %v6289_v22 = vld [vmem:[%s7246_s26 + $0x20] sm:$0x1] }
  0xe9   : > { %6799 = vmatmul.mubr.msk.bf16.gmra.mrb[16].mxu0 %vm356_vm1, %v6263_v7  ;;  %v4592_v45 = vrot.slane %v4590_v8, 5  ;;  %v4597_v53 = vrot.slane %v4595_v15, 4  ;;  %v4598_v63 = vshll.u32 %v6243_v2, 16  ;;  %v4604_v1 = vshll.u32 %v6244_v59, 16  ;;  %v6290_v35 = vld [vmem:[%s7246_s26 + $0x24] sm:$0xe] }
  0xea   : > { %6802 = vmatprep.mubr.msk.bf16.mxu0 %vm356_vm1, %v6264_v51  ;;  %v4569_v28 = vsel %vm7278_vm4, %v4564_v16, %v4568_v49  ;;  %v4608_v30 = vshrl.u32 %v6244_v59, 16  ;;  %v4578_v17 = vrot.slane %v4577_v4, 4  ;;  %v4587_v36 = vor.u32 %v4586_v26, %v4582_v3  ;;  %v6292_v4 = vld [vmem:[%s7246_s26 + $0x2c] sm:$0x1]  ;;  %v6293_v26 = vld [vmem:[%s7246_s26 + $0x30] sm:$0xe] }
  0xeb   : > { %v6265_v32 = vcombine.low %v4559_v57, %v4569_v28  ;;  %v4614_v37 = vshll.u32 %v6245_v19, 16  ;;  %v4600_v27 = vrot.slane %v4598_v63, 5  ;;  %v4606_v9 = vrot.slane %v4604_v1, 5  ;;  %v6291_v57 = vld [vmem:[%s7246_s26 + $0x28] sm:$0xf] }
  0xec   : > { %v4610_v10 = vrot.slane %v4608_v30, 4  ;;  %v4619_v34 = vshrl.u32 %v6246_v23, 16  ;;  %v4583_v31 = vsel %vm7278_vm4, %v4578_v17, %v4582_v3  ;;  %v4588_v50 = vrot.slane %v4587_v36, 4 }
  0xed   : > { %v4616_v12 = vrot.slane %v4614_v37, 5  ;;  %v4622_v43 = vshll.u32 %v6246_v23, 16  ;;  %v4601_v21 = vor.u32 %v4600_v27, %v4597_v53  ;;  %v4628_v33 = vshll.u32 %v6247_v5, 16 }
  0xee   : > { %6651 = vmatmul.mubr.msk.bf16.gmra.mrb[4].mxu1 %vm356_vm1, %v7169_v6  ;;  %v4611_v38 = vor.u32 %v4610_v10, %v4606_v9  ;;  %v4621_v14 = vrot.slane %v4619_v34, 4  ;;  %v4593_v47 = vsel %vm7278_vm4, %v4588_v50, %v4592_v45  ;;  %v4632_v61 = vshrl.u32 %v6247_v5, 16  ;;  %v6294_v45 = vld [vmem:[%s7246_s26 + $0x34] sm:$0xf]  ;;  %v7173_v50 = vld [vmem:[%s7246_s26 + $0x60] sm:$0xff]  }
  0xef   : > { %6654 = vmatprep.mubr.msk.bf16.mxu1 %vm356_vm1, %v7170_v25  ;;  %v4624_v13 = vrot.slane %v4622_v43, 5  ;;  %v4638_v44 = vshll.u32 %v6248_v24, 16  ;;  %v6266_v55 = vcombine.low %v4583_v31, %v4593_v47  ;;  %v4602_v58 = vrot.slane %v4601_v21, 4  ;;  %v6295_v24 = vld [vmem:[%s7246_s26 + $0x38] sm:$0x1] }
  0xf0   : > { %v4612_v7 = vrot.slane %v4611_v38, 4  ;;  %v4630_v11 = vrot.slane %v4628_v33, 5  ;;  %v4634_v41 = vrot.slane %v4632_v61, 4  ;;  %v4643_v56 = vshrl.u32 %v6249_v20, 16  ;;  %v6297_v31 = vld [vmem:[%s7246_s26 + $0x40] sm:$0xf] }
  0xf1   : > { %6803 = vmatmul.mubr.msk.bf16.gmra.mrb[20].mxu0 %vm356_vm1, %v6265_v32  ;;  %v4625_v2 = vor.u32 %v4624_v13, %v4621_v14  ;;  %v4640_v49 = vrot.slane %v4638_v44, 5  ;;  %v4607_v59 = vsel %vm7278_vm4, %v4602_v58, %v4606_v9  ;;  %v4646_v0 = vshll.u32 %v6249_v20, 16  ;;  %v6296_v20 = vld [vmem:[%s7246_s26 + $0x3c] sm:$0xe]  ;;  %v6298_v38 = vld [vmem:[%s7246_s26 + $0x44] sm:$0x1] }
  0xf2   : > { %6806 = vmatprep.mubr.msk.bf16.mxu0 %vm356_vm1, %v6266_v55  ;;  %v4617_v60 = vsel %vm7278_vm4, %v4612_v7, %v4616_v12  ;;  %v4652_v29 = vshll.u32 %v6250_v62, 16  ;;  %v4635_v15 = vor.u32 %v4634_v41, %v4630_v11  ;;  %v4645_v51 = vrot.slane %v4643_v56, 4  ;;  %v7174_v14 = vld [vmem:[%s7246_s26 + $0x6c] sm:$0xff]   ;;  %v6299_v44 = vld [vmem:[%s7246_s26 + $0x48] sm:$0xe] }
  0xf3   : > { %v6267_v40 = vcombine.low %v4607_v59, %v4617_v60  ;;  %v4626_v8 = vrot.slane %v4625_v2, 4  ;;  %v4648_v16 = vrot.slane %v4646_v0, 5  ;;  %v4656_v19 = vshrl.u32 %v6250_v62, 16  ;;  %v6302_v0 = vld [vmem:[%s7246_s26 + $0x54] sm:$0xe] }
  0xf4   : > { %v4654_v3 = vrot.slane %v4652_v29, 5  ;;  %v4662_v6 = vshll.u32 %v6251_v52, 16  ;;  %v4636_v23 = vrot.slane %v4635_v15, 4  ;;  %v6335_v25 = vrot.slane %v6287_v48, 9  ;;  %v6300_v52 = vld [vmem:[%s7246_s26 + $0x4c] sm:$0xf] }
  0xf5   : > { %v4631_v53 = vsel %vm7278_vm4, %v4626_v8, %v4630_v11  ;;  %v5128_v28 = vrot.slane %v6288_v18, 5  ;;  %v4649_v63 = vor.u32 %v4648_v16, %v4645_v51  ;;  %v4658_v1 = vrot.slane %v4656_v19, 4  ;;  %v6301_v11 = vld [vmem:[%s7246_s26 + $0x50] sm:$0x1]  ;;  %v5979_v29 = vld [vmem:[%s7246_s26 + $0x6c] sm:$0xf] }
  0xf6   : > { %6655 = vmatmul.mubr.msk.bf16.gmra.mrb[8].mxu1 %vm356_vm1, %v7171_v42  ;;  %v4664_v30 = vrot.slane %v4662_v6, 5  ;;  %v5131_v32 = vrot.slane %v6289_v22, 5  ;;  %v4641_v17 = vsel %vm7278_vm4, %v4636_v23, %v4640_v49  ;;  %v6336_v5 = vrot.slane %v6290_v35, 9  ;;  %v6303_v49 = vld [vmem:[%s7246_s26 + $0x58] sm:$0xf] }
  0xf7   : > { %6658 = vmatprep.mubr.msk.bf16.mxu1 %vm356_vm1, %v7172_v46  ;;  %v5129_v36 = vsel %vm7353_vm7, %v6335_v25, %v5128_v28  ;;  %v5130_v37 = vrot.slane %v5128_v28, 4  ;;  %v6268_v27 = vcombine.low %v4631_v53, %v4641_v17  ;;  %v4650_v9 = vrot.slane %v4649_v63, 4  ;;  %v5980_v8 = vld [vmem:[%s7246_s26 + $0x70] sm:$0xf]  ;;  %v7175_v53 = vld [vmem:[%s7246_s26 + $0x78] sm:$0xff]  }
  0xf8   : > { %v4659_v10 = vor.u32 %v4658_v1, %v4654_v3  ;;  %v5135_v34 = vrot.slane %v6291_v57, 5  ;;  %v5138_v43 = vrot.slane %v6292_v4, 5  ;;  %v6337_v62 = vrot.slane %v6293_v26, 9  ;;  %v7176_v1 = vld [vmem:[%s7246_s26 + $0x84] sm:$0xff]  }
  0xf9   : > { %6807 = vmatmul.mubr.msk.bf16.gmra.mrb[24].mxu0 %vm356_vm1, %v6267_v40  ;;  %v5132_v12 = vsel %vm7353_vm7, %v5130_v37, %v5131_v32  ;;  %v5142_v21 = vrot.slane %v6294_v45, 5  ;;  %v4655_v33 = vsel %vm7278_vm4, %v4650_v9, %v4654_v3  ;;  %v5145_v7 = vrot.slane %v6295_v24, 5  ;;  %v6304_v40 = vld [vmem:[%s7246_s26 + $0x5c] sm:$0x1]  ;;  %v5981_v3 = vld [vmem:[%s7246_s26 + $0x74] sm:$0x1] }
  0xfa   : > { %6810 = vmatprep.mubr.msk.bf16.mxu0 %vm356_vm1, %v6268_v27  ;;  %v4660_v47 = vrot.slane %v4659_v10, 4  ;;  %v6353_v13 = vcombine.low %v5129_v36, %v5132_v12  ;;  %v8143_v61 = vsel %vm7353_vm7, %v6336_v5, %v5135_v34  ;;  %v5137_v42 = vrot.slane %v5135_v34, 4  ;;  %v5982_v45 = vld [vmem:[%s7246_s26 + $0x78] sm:$0xf]  ;;  %v5983_v27 = vld [vmem:[%s7246_s26 + $0x7c] sm:$0xf] }
  0xfb   : > { %v8149_v55 = vsel %vm7353_vm7, %v6337_v62, %v5142_v21  ;;  %v5144_v58 = vrot.slane %v5142_v21, 4  ;;  %v6338_v46 = vrot.slane %v6296_v20, 9  ;;  %v5149_v2 = vrot.slane %v6297_v31, 5  ;;  %v6306_v12 = vld [vmem:[%s7246_s26 + $0x64] sm:$0xf] }
  0xfc   : > { %v4665_v48 = vsel %vm7278_vm4, %v4660_v47, %v4664_v30  ;;  %v5152_v41 = vrot.slane %v6298_v38, 5  ;;  %v5139_v18 = vsel %vm7353_vm7, %v5137_v42, %v5138_v43  ;;  %v6339_v60 = vrot.slane %v6299_v44, 9 }
  0xfd   : > { %v6269_v56 = vcombine.low %v4655_v33, %v4665_v48  ;;  %v8160_v59 = vsel %vm7353_vm7, %v5144_v58, %v5145_v7  ;;  %v6354_v22 = vcombine.low %v8143_v61, %v5139_v18  ;;  %v5151_v35 = vrot.slane %v5149_v2, 4  ;;  %v6307_v33 = vld [vmem:[%s7246_s26 + $0x68] sm:$0x1] }
  0xfe   : > { %6659 = vmatmul.mubr.msk.bf16.gmra.mrb[12].mxu1 %vm356_vm1, %v7173_v50  ;;  %v6355_v15 = vcombine.low %v8149_v55, %v8160_v59  ;;  %v5156_v51 = vrot.slane %v6300_v52, 5  ;;  %v5159_v57 = vrot.slane %v6301_v11, 5  ;;  %v5163_v16 = vrot.slane %v6303_v49, 5  ;;  %v5984_v50 = vld [vmem:[%s7246_s26 + $0x80] sm:$0x1] }
  0xff   : > { %6662 = vmatprep.mubr.msk.bf16.mxu1 %vm356_vm1, %v7174_v14  ;;  %v8174_v19 = vsel %vm7353_vm7, %v6338_v46, %v5149_v2  ;;  %v6340_v6 = vrot.slane %v6302_v0, 9  ;;  %v2678_v4 = vshrl.u32 %v5979_v29, 16  ;;  %v2681_v26 = vshll.u32 %v5979_v29, 16  ;;  %v6305_v14 = vld [vmem:[%s7246_s26 + $0x60] sm:$0xe] }
 0x100   : > { %v8181_v23 = vsel %vm7353_vm7, %v5151_v35, %v5152_v41  ;;  %v8185_v25 = vsel %vm7353_vm7, %v6339_v60, %v5156_v51  ;;  %v5158_v28 = vrot.slane %v5156_v51, 4  ;;  %v5166_v63 = vrot.slane %v6304_v40, 5  ;;  %v6308_v52 = vld [vmem:[%s7246_s26 + $0x6c] sm:$0xe]  ;;  %v6309_v11 = vld [vmem:[%s7246_s26 + $0x70] sm:$0xf] }
 0x101   : > { %6811 = vmatmul.mubr.msk.bf16.gmra.mrb[28].mxu0 %vm356_vm1, %v6269_v56  ;;  %v5165_v30 = vrot.slane %v5163_v16, 4  ;;  %v2680_v32 = vrot.slane %v2678_v4, 4  ;;  %v2683_v17 = vrot.slane %v2681_v26, 5  ;;  %v2687_v36 = vshll.u32 %v5980_v8, 16  ;;  %v5985_v49 = vld [vmem:[%s7246_s26 + $0x84] sm:$0xf] }
 0x102   : > { %6816 = vmatprep.mubr.msk.bf16.mxu0 %vm356_vm1, %v6353_v13  ;;  %v8190_v37 = vsel %vm7353_vm7, %v5158_v28, %v5159_v57  ;;  %v2691_v5 = vshrl.u32 %v5980_v8, 16  ;;  %v2697_v24 = vshll.u32 %v5981_v3, 16  ;;  %v2702_v9 = vshrl.u32 %v5982_v45, 16  ;;  %v7177_v56 = vld [vmem:[%s7246_s26 + $0x90] sm:$0xff]   ;;  %v7178_v29 = vld [vmem:[%s7246_s26 + $0x9c] sm:$0xff]  }
 0x103   : > { %v6356_v10 = vcombine.low %v8174_v19, %v8181_v23  ;;  %v8197_v34 = vsel %vm7353_vm7, %v6340_v6, %v5163_v16  ;;  %v2684_v20 = vor.u32 %v2683_v17, %v2680_v32  ;;  %v2689_v31 = vrot.slane %v2687_v36, 5  ;;  %v6310_v51 = vld [vmem:[%s7246_s26 + $0x74] sm:$0x1]  ;;  %v5986_v3 = vld [vmem:[%s7246_s26 + $0x88] sm:$0xf] }
 0x104   : > { %v6357_v43 = vcombine.low %v8185_v25, %v8190_v37  ;;  %v8206_v62 = vsel %vm7353_vm7, %v5165_v30, %v5166_v63  ;;  %v2693_v21 = vrot.slane %v2691_v5, 4  ;;  %v2704_v38 = vrot.slane %v2702_v9, 4  ;;  %v5987_v28 = vld [vmem:[%s7246_s26 + $0x8c] sm:$0x1]  ;;  %v5988_v17 = vld [vmem:[%s7246_s26 + $0x90] sm:$0xf] }
 0x105   : > { %v2685_v47 = vrot.slane %v2684_v20, 4  ;;  %v2705_v13 = vshll.u32 %v5982_v45, 16  ;;  %v2711_v61 = vshll.u32 %v5983_v27, 16  ;;  %v2715_v44 = vshrl.u32 %v5983_v27, 16  ;;  %v5989_v9 = vld [vmem:[%s7246_s26 + $0x94] sm:$0xf] }
 0x106   : > { %6663 = vmatmul.mubr.msk.bf16.gmra.mrb[16].mxu1 %vm356_vm1, %v7175_v53  ;;  %v2694_v42 = vor.u32 %v2693_v21, %v2689_v31  ;;  %v2699_v55 = vrot.slane %v2697_v24, 5  ;;  %v2721_v58 = vshll.u32 %v5984_v50, 16  ;;  %v5170_v7 = vrot.slane %v6306_v12, 5  ;;  %v5990_v21 = vld [vmem:[%s7246_s26 + $0x98] sm:$0x1] }
 0x107   : > { %6666 = vmatprep.mubr.msk.bf16.mxu1 %vm356_vm1, %v7176_v1  ;;  %v2707_v48 = vrot.slane %v2705_v13, 5  ;;  %v2713_v46 = vrot.slane %v2711_v61, 5  ;;  %v2717_v2 = vrot.slane %v2715_v44, 4  ;;  %v6341_v41 = vrot.slane %v6305_v14, 9  ;;  %v6312_v61 = vld [vmem:[%s7246_s26 + $0x7c] sm:$0xf] }
 0x108   : > { %v6358_v18 = vcombine.low %v8197_v34, %v8206_v62  ;;  %v2690_v59 = vsel %vm7278_vm4, %v2685_v47, %v2689_v31  ;;  %v2695_v60 = vrot.slane %v2694_v42, 4  ;;  %v5172_v0 = vrot.slane %v5170_v7, 4  ;;  %v7179_v44 = vld [vmem:[%s7246_s26 + $0xa8] sm:$0xff]   ;;  %v6313_v42 = vld [vmem:[%s7246_s26 + $0x80] sm:$0x1] }
 0x109   : > { %6817 = vmatmul.mubr.msk.bf16.vlgmr.msra.gmra.mrb[0].mxu0 %vm356_vm1, %v6354_v22  ;;  %v2708_v22 = vor.u32 %v2707_v48, %v2704_v38  ;;  %v2718_v35 = vor.u32 %v2717_v2, %v2713_v46  ;;  %v2723_v40 = vrot.slane %v2721_v58, 5  ;;  %v5173_v8 = vrot.slane %v6307_v33, 5  ;;  %v6311_v38 = vld [vmem:[%s7246_s26 + $0x78] sm:$0xe] }
 0x10a   : > { %6820 = vmatprep.mubr.msk.bf16.mxu0 %vm356_vm1, %v6355_v15  ;;  %v2700_v57 = vsel %vm7278_vm4, %v2695_v60, %v2699_v55  ;;  %v6342_v15 = vrot.slane %v6308_v52, 9  ;;  %v5177_v16 = vrot.slane %v6309_v11, 5  ;;  %v2726_v6 = vshrl.u32 %v5985_v49, 16  ;;  %v7180_v55 = vld [vmem:[%s7246_s26 + $0xb4] sm:$0xff]  }
 0x10b   : > { %v2709_v4 = vrot.slane %v2708_v22, 4  ;;  %v2719_v26 = vrot.slane %v2718_v35, 4  ;;  %v8228_v45 = vsel %vm7353_vm7, %v6341_v41, %v5170_v7  ;;  %v8232_v53 = vsel %vm7353_vm7, %v5172_v0, %v5173_v8  ;;  %v6315_v41 = vld [vmem:[%s7246_s26 + $0x88] sm:$0xf]  ;;  %v6316_v0 = vld [vmem:[%s7246_s26 + $0x8c] sm:$0x1] }
 0x10c   : > { %v8236_v63 = vcombine.low %v2690_v59, %v2700_v57  ;;  %v5179_v1 = vrot.slane %v5177_v16, 4  ;;  %v5180_v30 = vrot.slane %v6310_v51, 5  ;;  %v2728_v32 = vrot.slane %v2726_v6, 4  ;;  %v5991_v8 = vld [vmem:[%s7246_s26 + $0x9c] sm:$0xf] }
 0x10d   : > { %v2714_v36 = vsel %vm7278_vm4, %v2709_v4, %v2713_v46  ;;  %v2724_v5 = vsel %vm7278_vm4, %v2719_v26, %v2723_v40  ;;  %v2729_v24 = vshll.u32 %v5985_v49, 16  ;;  %v2735_v27 = vshll.u32 %v5986_v3, 16  ;;  %v6314_v46 = vld [vmem:[%s7246_s26 + $0x84] sm:$0xe] }
 0x10e   : > { %6667 = vmatmul.mubr.msk.bf16.gmra.mrb[20].mxu1 %vm356_vm1, %v7177_v56  ;;  %v6359_v20 = vcombine.low %v8228_v45, %v8232_v53  ;;  %v8249_v31 = vsel %vm7353_vm7, %v6342_v15, %v5177_v16  ;;  %v2739_v50 = vshrl.u32 %v5986_v3, 16  ;;  %v2745_v12 = vshll.u32 %v5987_v28, 16  ;;  %v5992_v45 = vld [vmem:[%s7246_s26 + $0xa0] sm:$0xf] }
 0x10f   : > { %6670 = vmatprep.mubr.msk.bf16.mxu1 %vm356_vm1, %v7178_v29  ;;  %v8257_v14 = vcombine.low %v2714_v36, %v2724_v5  ;;  %v2731_v33 = vrot.slane %v2729_v24, 5  ;;  %v2737_v47 = vrot.slane %v2735_v27, 5  ;;  %v2750_v13 = vshrl.u32 %v5988_v17, 16  ;;  %v5994_v5 = vld [vmem:[%s7246_s26 + $0xa8] sm:$0xf] }
 0x110   : > { %v8267_v52 = vsel %vm7353_vm7, %v5179_v1, %v5180_v30  ;;  %v2741_v19 = vrot.slane %v2739_v50, 4  ;;  %v2753_v23 = vshll.u32 %v5988_v17, 16  ;;  %v2763_v11 = vshrl.u32 %v5989_v9, 16  ;;  %v5993_v30 = vld [vmem:[%s7246_s26 + $0xa4] sm:$0x1] }
 0x111   : > { %6821 = vmatmul.mubr.msk.bf16.gmra.mrb[4].mxu0 %vm356_vm1, %v6356_v10  ;;  %v2759_v10 = vshll.u32 %v5989_v9, 16  ;;  %v2732_v58 = vor.u32 %v2731_v33, %v2728_v32  ;;  %v2752_v7 = vrot.slane %v2750_v13, 4  ;;  %v2769_v48 = vshll.u32 %v5990_v21, 16  ;;  %v7181_v17 = vld [vmem:[%s7246_s26 + $0xc0] sm:$0xff]   ;;  %v5995_v50 = vld [vmem:[%s7246_s26 + $0xac] sm:$0xf] }
 0x112   : > { %6824 = vmatprep.mubr.msk.bf16.mxu0 %vm356_vm1, %v6357_v43  ;;  %v2742_v25 = vor.u32 %v2741_v19, %v2737_v47  ;;  %v2747_v37 = vrot.slane %v2745_v12, 5  ;;  %v2755_v43 = vrot.slane %v2753_v23, 5  ;;  %v2765_v56 = vrot.slane %v2763_v11, 4  ;;  %v5996_v33 = vld [vmem:[%s7246_s26 + $0xb0] sm:$0x1] }
 0x113   : > { %v8272_v2 = vrot.slane %v2759_v10, 5  ;;  %v2733_v49 = vrot.slane %v2732_v58, 4  ;;  %v6343_v59 = vrot.slane %v6311_v38, 9  ;;  %v5184_v60 = vrot.slane %v6312_v61, 5  ;;  %v6318_v19 = vld [vmem:[%s7246_s26 + $0x94] sm:$0xf] }
 0x114   : > { %v2743_v29 = vrot.slane %v2742_v25, 4  ;;  %v2756_v22 = vor.u32 %v2755_v43, %v2752_v7  ;;  %v8277_v35 = vrot.slane %v2769_v48, 5  ;;  %v5187_v40 = vrot.slane %v6313_v42, 5  ;;  %v6319_v58 = vld [vmem:[%s7246_s26 + $0x98] sm:$0x1] }
 0x115   : > { %v2738_v51 = vsel %vm7278_vm4, %v2733_v49, %v2737_v47  ;;  %v2766_v57 = vor.u32 %v2765_v56, %v8272_v2  ;;  %v5186_v15 = vrot.slane %v5184_v60, 4  ;;  %v6344_v16 = vrot.slane %v6314_v46, 9  ;;  %v6317_v47 = vld [vmem:[%s7246_s26 + $0x90] sm:$0xe]  ;;  %v6320_v25 = vld [vmem:[%s7246_s26 + $0x9c] sm:$0xe] }
 0x116   : > { %6671 = vmatmul.mubr.msk.bf16.gmra.mrb[24].mxu1 %vm356_vm1, %v7179_v44  ;;  %v2748_v3 = vsel %vm7278_vm4, %v2743_v29, %v2747_v37  ;;  %v8286_v6 = vrot.slane %v2756_v22, 4  ;;  %v5191_v4 = vrot.slane %v6315_v41, 5  ;;  %v5194_v26 = vrot.slane %v6316_v0, 5  ;;  %v6321_v56 = vld [vmem:[%s7246_s26 + $0xa0] sm:$0xf] }
 0x117   : > { %6674 = vmatprep.mubr.msk.bf16.mxu1 %vm356_vm1, %v7180_v55  ;;  %v8293_v53 = vrot.slane %v2766_v57, 4  ;;  %v5185_v28 = vsel %vm7353_vm7, %v6343_v59, %v5184_v60  ;;  %v5188_v1 = vsel %vm7353_vm7, %v5186_v15, %v5187_v40  ;;  %v2774_v32 = vshrl.u32 %v5991_v8, 16 }
 0x118   : > { %v6360_v34 = vcombine.low %v8249_v31, %v8267_v52  ;;  %v8304_v62 = vcombine.low %v2738_v51, %v2748_v3  ;;  %v5193_v36 = vrot.slane %v5191_v4, 4  ;;  %v8313_v24 = vsel %vm7353_vm7, %v6344_v16, %v5191_v4  ;;  %v5997_v51 = vld [vmem:[%s7246_s26 + $0xb4] sm:$0xf] }
 0x119   : > { %6825 = vmatmul.mubr.msk.bf16.gmra.mrb[8].mxu0 %vm356_vm1, %v6358_v18  ;;  %v2762_v18 = vsel %vm7278_vm4, %v8286_v6, %v8272_v2  ;;  %v2776_v27 = vrot.slane %v2774_v32, 4  ;;  %v2777_v9 = vshll.u32 %v5991_v8, 16  ;;  %v6361_v12 = vcombine.low %v5185_v28, %v5188_v1  ;;  %v5998_v28 = vld [vmem:[%s7246_s26 + $0xb8] sm:$0xf] }
 0x11a   : > { %6828 = vmatprep.mubr.msk.bf16.mxu0 %vm356_vm1, %v6359_v20  ;;  %v2783_v20 = vshll.u32 %v5992_v45, 16  ;;  %v8318_v31 = vsel %vm7353_vm7, %v5193_v36, %v5194_v26  ;;  %v2787_v21 = vshrl.u32 %v5992_v45, 16  ;;  %v2793_v38 = vshll.u32 %v5993_v30, 16 }
 0x11b   : > { %v2772_v13 = vsel %vm7278_vm4, %v8293_v53, %v8277_v35  ;;  %v2779_v61 = vrot.slane %v2777_v9, 5  ;;  %v2798_v52 = vshrl.u32 %v5994_v5, 16  ;;  %v6362_v23 = vcombine.low %v8313_v24, %v8318_v31  ;;  %v6000_v9 = vld [vmem:[%s7246_s26 + $0xc0] sm:$0xf]  ;;  %v6001_v31 = vld [vmem:[%s7246_s26 + $0xc4] sm:$0xf] }
 0x11c   : > { %v2785_v44 = vrot.slane %v2783_v20, 5  ;;  %v2789_v10 = vrot.slane %v2787_v21, 4  ;;  %v2801_v42 = vshll.u32 %v5994_v5, 16  ;;  %v2807_v55 = vshll.u32 %v5995_v50, 16 }
 0x11d   : > { %v2780_v7 = vor.u32 %v2779_v61, %v2776_v27  ;;  %v2795_v11 = vrot.slane %v2793_v38, 5  ;;  %v2800_v48 = vrot.slane %v2798_v52, 4  ;;  %v2811_v46 = vshrl.u32 %v5995_v50, 16  ;;  %v6323_v38 = vld [vmem:[%s7246_s26 + $0xa8] sm:$0xe] }
 0x11e   : > { %6675 = vmatmul.mubr.msk.bf16.gmra.mrb[28].mxu1 %vm356_vm1, %v7181_v17  ;;  %v2790_v37 = vor.u32 %v2789_v10, %v2785_v44  ;;  %v2803_v43 = vrot.slane %v2801_v42, 5  ;;  %v8334_v41 = vrot.slane %v2807_v55, 5  ;;  %v6345_v49 = vrot.slane %v6317_v47, 9  ;;  %v5999_v17 = vld [vmem:[%s7246_s26 + $0xbc] sm:$0x1] }
 0x11f   : > { %6696 = vmatprep.mubr.msk.bf16.mxu1 %vm356_vm1, %v8236_v63  ;;  %v2781_v59 = vrot.slane %v2780_v7, 4  ;;  %v2813_v60 = vrot.slane %v2811_v46, 4  ;;  %v2817_v0 = vshll.u32 %v5996_v33, 16  ;;  %v5198_v29 = vrot.slane %v6318_v19, 5  ;;  %v6322_v63 = vld [vmem:[%s7246_s26 + $0xa4] sm:$0x1] }
 0x120   : > { %v2791_v22 = vrot.slane %v2790_v37, 4  ;;  %v2804_v35 = vor.u32 %v2803_v43, %v2800_v48  ;;  %v5201_v40 = vrot.slane %v6319_v58, 5  ;;  %v6346_v8 = vrot.slane %v6320_v25, 9  ;;  %v6325_v55 = vld [vmem:[%s7246_s26 + $0xb0] sm:$0x1] }
 0x121   : > { %6829 = vmatmul.mubr.msk.bf16.gmra.mrb[12].mxu0 %vm356_vm1, %v6360_v34  ;;  %v2786_v57 = vsel %vm7278_vm4, %v2781_v59, %v2785_v44  ;;  %v2814_v15 = vor.u32 %v2813_v60, %v8334_v41  ;;  %v5199_v16 = vsel %vm7353_vm7, %v6345_v49, %v5198_v29  ;;  %v5200_v3 = vrot.slane %v5198_v29, 4  ;;  %v6324_v44 = vld [vmem:[%s7246_s26 + $0xac] sm:$0xf]  ;;  %v6326_v48 = vld [vmem:[%s7246_s26 + $0xb4] sm:$0xe] }
 0x122   : > { %6832 = vmatprep.mubr.msk.bf16.mxu0 %vm356_vm1, %v6361_v12  ;;  %v2796_v4 = vsel %vm7278_vm4, %v2791_v22, %v2795_v11  ;;  %v8348_v26 = vrot.slane %v2804_v35, 4  ;;  %v5205_v45 = vrot.slane %v6321_v56, 5  ;;  %v5208_v53 = vrot.slane %v6322_v63, 5 }
 0x123   : > { %v8351_v1 = vrot.slane %v2814_v15, 4  ;;  %v8353_v30 = vrot.slane %v2817_v0, 5  ;;  %v5202_v32 = vsel %vm7353_vm7, %v5200_v3, %v5201_v40  ;;  %v2822_v34 = vshrl.u32 %v5997_v51, 16  ;;  %v6328_v0 = vld [vmem:[%s7246_s26 + $0xbc] sm:$0x1] }
 0x124   : > { %v6016_v36 = vcombine.low %v2762_v18, %v2772_v13  ;;  %v6017_v5 = vcombine.low %v2786_v57, %v2796_v4  ;;  %v6363_v24 = vcombine.low %v5199_v16, %v5202_v32  ;;  %v5207_v27 = vrot.slane %v5205_v45, 4  ;;  %v6329_v40 = vld [vmem:[%s7246_s26 + $0xc0] sm:$0xe]  ;;  %v6333_v32 = vld [vmem:[%s7246_s26 + $0xd0] sm:$0xf] }
 0x125   : > { %v5206_v20 = vsel %vm7353_vm7, %v6346_v8, %v5205_v45  ;;  %v2825_v50 = vshll.u32 %v5997_v51, 16  ;;  %v2831_v12 = vshll.u32 %v5998_v28, 16  ;;  %v2810_v2 = vsel %vm7278_vm4, %v8348_v26, %v8334_v41  ;;  %v6327_v41 = vld [vmem:[%s7246_s26 + $0xb8] sm:$0xf]  ;;  %v6330_v26 = vld [vmem:[%s7246_s26 + $0xc4] sm:$0xf] }
 0x126   : > { %6697 = vmatmul.mubr.msk.bf16.vlgmr.msra.gmra.mrb[16].mxu1 %vm356_vm1, %v8257_v14  ;;  %v2824_v14 = vrot.slane %v2822_v34, 4  ;;  %v5209_v6 = vsel %vm7353_vm7, %v5207_v27, %v5208_v53  ;;  %v2835_v18 = vshrl.u32 %v5998_v28, 16  ;;  %v2841_v21 = vshll.u32 %v5999_v17, 16  ;;  %v6331_v45 = vld [vmem:[%s7246_s26 + $0xc8] sm:$0x1] }
 0x127   : > { %6700 = vmatprep.mubr.msk.bf16.mxu1 %vm356_vm1, %v8304_v62  ;;  %v6002_v62 = vld [vmem:[%s7246_s26 + $0xc8] sm:$0x1]  ;;  %v2820_v33 = vsel %vm7278_vm4, %v8351_v1, %v8353_v30  ;;  %v2827_v47 = vrot.slane %v2825_v50, 5  ;;  %v2833_v13 = vrot.slane %v2831_v12, 5  ;;  %v2846_v61 = vshrl.u32 %v6000_v9, 16 }
 0x128   : > { %v6364_v52 = vcombine.low %v5206_v20, %v5209_v6  ;;  %v2837_v19 = vrot.slane %v2835_v18, 4  ;;  %v2849_v10 = vshll.u32 %v6000_v9, 16  ;;  %v2855_v42 = vshll.u32 %v6001_v31, 16  ;;  %v6334_v50 = vld [vmem:[%s7246_s26 + $0xd4] sm:$0x1] }
 0x129   : > { %6833 = vmatmul.mubr.msk.bf16.gmra.mrb[16].mxu0 %vm356_vm1, %v6362_v23  ;;  %v2828_v23 = vor.u32 %v2827_v47, %v2824_v14  ;;  %v2843_v58 = vrot.slane %v2841_v21, 5  ;;  %v2848_v7 = vrot.slane %v2846_v61, 4  ;;  %v2859_v11 = vshrl.u32 %v6001_v31, 16 }
 0x12a   : > { %6836 = vmatprep.mubr.msk.bf16.mxu0 %vm356_vm1, %v6363_v24  ;;  %v2838_v46 = vor.u32 %v2837_v19, %v2833_v13  ;;  %v2851_v25 = vrot.slane %v2849_v10, 5  ;;  %v2857_v37 = vrot.slane %v2855_v42, 5  ;;  %v6347_v43 = vrot.slane %v6323_v38, 9  ;;  %v6332_v24 = vld [vmem:[%s7246_s26 + $0xcc] sm:$0xe] }
 0x12b   : > { %v2829_v49 = vrot.slane %v2828_v23, 4  ;;  %v2861_v56 = vrot.slane %v2859_v11, 4  ;;  %v2865_v59 = vshll.u32 %v6002_v62, 16  ;;  %v5212_v60 = vrot.slane %v6324_v44, 5 }
 0x12c   : > { %v2839_v29 = vrot.slane %v2838_v46, 4  ;;  %v2852_v63 = vor.u32 %v2851_v25, %v2848_v7  ;;  %v5215_v22 = vrot.slane %v6325_v55, 5  ;;  %v6348_v35 = vrot.slane %v6326_v48, 9 }
 0x12d   : > { %v2862_v8 = vor.u32 %v2861_v56, %v2857_v37  ;;  %v5213_v51 = vsel %vm7353_vm7, %v6347_v43, %v5212_v60  ;;  %v5214_v57 = vrot.slane %v5212_v60, 4  ;;  %v2834_v15 = vsel %vm7278_vm4, %v2829_v49, %v2833_v13  ;;  %v8434_v60 = vld [vmem:[%s8510_s2] ss:$0 sm:$0xff] }
 0x12e   : > { %6701 = vmatmul.mubr.msk.bf16.gmra.mrb[20].mxu1 %vm356_vm1, %v6016_v36  ;;  %v2844_v16 = vsel %vm7278_vm4, %v2839_v29, %v2843_v58  ;;  %v5219_v3 = vrot.slane %v6327_v41, 5  ;;  %v5222_v4 = vrot.slane %v6328_v0, 5  ;;  %v6018_v53 = vcombine.low %v2810_v2, %v2820_v33 }
 0x12f   : > { %6704 = vmatprep.mubr.msk.bf16.mxu1 %vm356_vm1, %v6017_v5  ;;  %v2867_v28 = vrot.slane %v2865_v59, 5  ;;  %v5216_v1 = vsel %vm7353_vm7, %v5214_v57, %v5215_v22  ;;  %v6349_v30 = vrot.slane %v6329_v40, 9  ;;  %v2853_v17 = vrot.slane %v2852_v63, 4 }
 0x130   : > { %v6365_v34 = vcombine.low %v5213_v51, %v5216_v1  ;;  %v5220_v36 = vsel %vm7353_vm7, %v6348_v35, %v5219_v3  ;;  %v5221_v5 = vrot.slane %v5219_v3, 4  ;;  %v6019_v27 = vcombine.low %v2834_v15, %v2844_v16 }
 0x131   : > { %6837 = vmatmul.mubr.msk.bf16.gmra.mrb[20].mxu0 %vm356_vm1, %v6364_v52  ;;  %v2863_v9 = vrot.slane %v2862_v8, 4  ;;  %v5226_v20 = vrot.slane %v6330_v26, 5  ;;  %v5229_v14 = vrot.slane %v6331_v45, 5  ;;  %v5233_v31 = vrot.slane %v6333_v32, 5 }
 0x132   : > { %6840 = vmatprep.mubr.msk.bf16.mxu0 %vm356_vm1, %v6365_v34  ;;  %v5223_v12 = vsel %vm7353_vm7, %v5221_v5, %v5222_v4  ;;  %v6350_v21 = vrot.slane %v6332_v24, 9  ;;  %v5236_v38 = vrot.slane %v6334_v50, 5  ;;  %v2858_v33 = vsel %vm7278_vm4, %v2853_v17, %v2857_v37 }
 0x133   : > { %v6366_v2 = vcombine.low %v5220_v36, %v5223_v12  ;;  %v5227_v6 = vsel %vm7353_vm7, %v6349_v30, %v5226_v20  ;;  %v5228_v18 = vrot.slane %v5226_v20, 4  ;;  %v5235_v62 = vrot.slane %v5233_v31, 4 }
 0x134   : > { %v2868_v47 = vsel %vm7278_vm4, %v2863_v9, %v2867_v28  ;;  %v5234_v52 = vsel %vm7353_vm7, %v6350_v21, %v5233_v31 }
 0x135   : > { %v5230_v13 = vsel %vm7353_vm7, %v5228_v18, %v5229_v14  ;;  %v6020_v44 = vcombine.low %v2858_v33, %v2868_v47  ;;  %v5237_v19 = vsel %vm7353_vm7, %v5235_v62, %v5236_v38 }
 0x136   : > { %6705 = vmatmul.mubr.msk.bf16.gmra.mrb[24].mxu1 %vm356_vm1, %v6018_v53  ;;  %v6367_v61 = vcombine.low %v5227_v6, %v5230_v13  ;;  %v6368_v10 = vcombine.low %v5234_v52, %v5237_v19 }
 0x137   : > { %6708 = vmatprep.mubr.msk.bf16.mxu1 %vm356_vm1, %v6019_v27 }
 0x139   : > { %6841 = vmatmul.mubr.msk.bf16.gmra.mrb[24].mxu0 %vm356_vm1, %v6366_v2 }
 0x13a   : > { %6844 = vmatprep.mubr.msk.bf16.mxu0 %vm356_vm1, %v6367_v61 }
 0x13e   : > { %6709 = vmatmul.mubr.msk.bf16.gmra.mrb[28].mxu1 %vm356_vm1, %v6020_v44 }
 0x141   : > { %6845 = vmatmul.mubr.msk.bf16.gmra.mrb[28].mxu0 %vm356_vm1, %v6368_v10 }
 0x1b9   : > { %v6648_v39 = vpop.f32.mrb[0].mxu1 }
 0x1ba   : > { %v2246_v42 = vpop.f32.mrb[1].mxu1 }
 0x1bb   : > { %v6649_v55 = vpop.f32.mrb[2].mxu1 }
 0x1bc   : > { %v2249_v23 = vpop.f32.mrb[3].mxu1 }
 0x1c1   : > { %v6652_v58 = vpop.f32.mrb[4].mxu1 }
 0x1c2   : > { %v2262_v7 = vpop.f32.mrb[5].mxu1 }
 0x1c3   : > { %v6653_v11 = vpop.f32.mrb[6].mxu1 }
 0x1c4   : > { %v2265_v48 = vpop.f32.mrb[7].mxu1 }
 0x1c9   : > { %v6656_v46 = vpop.f32.mrb[8].mxu1 }
 0x1ca   : > { %v2278_v25 = vpop.f32.mrb[9].mxu1 }
 0x1cb   : > { %v6657_v37 = vpop.f32.mrb[10].mxu1 }
 0x1cc   : > { %v2281_v43 = vpop.f32.mrb[11].mxu1 }
 0x1d1   : > { %v6660_v54 = vpop.f32.mrb[12].mxu1 }
 0x1d2   : > { %v2294_v41 = vpop.f32.mrb[13].mxu1 }
 0x1d3   : > { %v6661_v49 = vpop.f32.mrb[14].mxu1 }
 0x1d4   : > { %v2297_v56 = vpop.f32.mrb[15].mxu1 }
 0x1dc   : > { %v6818_v59 = vpop.f32.mrb[0].mxu0 }
 0x1dd   : > { %v6850_v0 = vadd.f32 %v6818_v59, %v6648_v39  ;;  %v5411_v29 = vpop.f32.mrb[1].mxu0 }
 0x1de   : > { %v6851_v63 = vadd.f32 %v5411_v29, %v2246_v42  ;;  %v6819_v22 = vpop.f32.mrb[2].mxu0 }
 0x1df   : > { %v5643_v35 = vadd.f32 %v6850_v0, %v8434_v60  ;;  %v6852_v40 = vadd.f32 %v6819_v22, %v6649_v55  ;;  %v5414_v8 = vpop.f32.mrb[3].mxu0 }
 0x1e0   : > { %v5641_v51 = vadd.f32 %v6851_v63, %v8434_v60  ;;  %v6853_v57 = vadd.f32 %v5414_v8, %v2249_v23 }
 0x1e1   : > { %5675 = vst [vmem:[%s8439_s20 + $0x10] sm:$0xff] %v5643_v35  ;;  %v5644_v15 = vadd.f32 %v6852_v40, %v8434_v60 }
 0x1e2   : > { %5673 = vst [vmem:[%s8439_s20] sm:$0xff] %v5641_v51  ;;  %v5642_v16 = vadd.f32 %v6853_v57, %v8434_v60 }
 0x1e3   : > { %5676 = vst [vmem:[%s8439_s20 + $0x18] sm:$0xff] %v5644_v15 }
 0x1e4   : > { %5674 = vst [vmem:[%s8439_s20 + $0x8] sm:$0xff] %v5642_v16  ;;  %v6822_v3 = vpop.f32.mrb[4].mxu0 }
 0x1e5   : > { %v6854_v4 = vadd.f32 %v6822_v3, %v6652_v58  ;;  %v5427_v26 = vpop.f32.mrb[5].mxu0 }
 0x1e6   : > { %v6855_v45 = vadd.f32 %v5427_v26, %v2262_v7  ;;  %v6823_v53 = vpop.f32.mrb[6].mxu0 }
 0x1e7   : > { %v5647_v28 = vadd.f32 %v6854_v4, %v8434_v60  ;;  %v6856_v1 = vadd.f32 %v6823_v53, %v6653_v11  ;;  %v5430_v30 = vpop.f32.mrb[7].mxu0 }
 0x1e8   : > { %v5645_v32 = vadd.f32 %v6855_v45, %v8434_v60  ;;  %v6857_v17 = vadd.f32 %v5430_v30, %v2265_v48 }
 0x1e9   : > { %5679 = vst [vmem:[%s8439_s20 + $0x30] sm:$0xff] %v5647_v28  ;;  %v5648_v34 = vadd.f32 %v6856_v1, %v8434_v60 }
 0x1ea   : > { %5677 = vst [vmem:[%s8439_s20 + $0x20] sm:$0xff] %v5645_v32  ;;  %v5646_v36 = vadd.f32 %v6857_v17, %v8434_v60 }
 0x1eb   : > { %5680 = vst [vmem:[%s8439_s20 + $0x38] sm:$0xff] %v5648_v34 }
 0x1ec   : > { %5678 = vst [vmem:[%s8439_s20 + $0x28] sm:$0xff] %v5646_v36  ;;  %v6826_v5 = vpop.f32.mrb[8].mxu0 }
 0x1ed   : > { %v6858_v24 = vadd.f32 %v6826_v5, %v6656_v46  ;;  %v5443_v27 = vpop.f32.mrb[9].mxu0 }
 0x1ee   : > { %v6859_v9 = vadd.f32 %v5443_v27, %v2278_v25  ;;  %v6827_v20 = vpop.f32.mrb[10].mxu0 }
 0x1ef   : > { %v5651_v14 = vadd.f32 %v6858_v24, %v8434_v60  ;;  %v6860_v50 = vadd.f32 %v6827_v20, %v6657_v37  ;;  %v5446_v12 = vpop.f32.mrb[11].mxu0 }
 0x1f0   : > { %v5649_v31 = vadd.f32 %v6859_v9, %v8434_v60  ;;  %v6861_v2 = vadd.f32 %v5446_v12, %v2281_v43 }
 0x1f1   : > { %5683 = vst [vmem:[%s8439_s20 + $0x50] sm:$0xff] %v5651_v14  ;;  %v5652_v6 = vadd.f32 %v6860_v50, %v8434_v60 }
 0x1f2   : > { %5681 = vst [vmem:[%s8439_s20 + $0x40] sm:$0xff] %v5649_v31  ;;  %v5650_v18 = vadd.f32 %v6861_v2, %v8434_v60 }
 0x1f3   : > { %5684 = vst [vmem:[%s8439_s20 + $0x58] sm:$0xff] %v5652_v6 }
 0x1f4   : > { %5682 = vst [vmem:[%s8439_s20 + $0x48] sm:$0xff] %v5650_v18  ;;  %v6830_v21 = vpop.f32.mrb[12].mxu0 }
 0x1f5   : > { %v6862_v62 = vadd.f32 %v6830_v21, %v6660_v54  ;;  %v5459_v38 = vpop.f32.mrb[13].mxu0 }
 0x1f6   : > { %v6863_v33 = vadd.f32 %v5459_v38, %v2294_v41  ;;  %v6831_v47 = vpop.f32.mrb[14].mxu0 }
 0x1f7   : > { %v5655_v13 = vadd.f32 %v6862_v62, %v8434_v60  ;;  %v6864_v61 = vadd.f32 %v6831_v47, %v6661_v49  ;;  %v5462_v44 = vpop.f32.mrb[15].mxu0 }
 0x1f8   : > { %v5653_v52 = vadd.f32 %v6863_v33, %v8434_v60  ;;  %v6865_v19 = vadd.f32 %v5462_v44, %v2297_v56 }
 0x1f9   : > { %v6698_v10 = vpop.f32.mrb[16].mxu1  ;;  %5687 = vst [vmem:[%s8439_s20 + $0x70] sm:$0xff] %v5655_v13  ;;  %v5656_v39 = vadd.f32 %v6864_v61, %v8434_v60 }
 0x1fa   : > { %v3106_v42 = vpop.f32.mrb[17].mxu1  ;;  %5685 = vst [vmem:[%s8439_s20 + $0x60] sm:$0xff] %v5653_v52  ;;  %v5654_v55 = vadd.f32 %v6865_v19, %v8434_v60 }
 0x1fb   : > { %v6699_v23 = vpop.f32.mrb[18].mxu1  ;;  %5688 = vst [vmem:[%s8439_s20 + $0x78] sm:$0xff] %v5656_v39 }
 0x1fc   : > { %v3109_v58 = vpop.f32.mrb[19].mxu1  ;;  %5686 = vst [vmem:[%s8439_s20 + $0x68] sm:$0xff] %v5654_v55  ;;  %v6834_v7 = vpop.f32.mrb[16].mxu0 }
 0x1fd   : > { %v6866_v11 = vadd.f32 %v6834_v7, %v6698_v10  ;;  %v5475_v48 = vpop.f32.mrb[17].mxu0 }
 0x1fe   : > { %v6867_v46 = vadd.f32 %v5475_v48, %v3106_v42  ;;  %v6835_v25 = vpop.f32.mrb[18].mxu0 }
 0x1ff   : > { %v5659_v37 = vadd.f32 %v6866_v11, %v8434_v60  ;;  %v6868_v43 = vadd.f32 %v6835_v25, %v6699_v23  ;;  %v5478_v54 = vpop.f32.mrb[19].mxu0 }
 0x200   : > { %v5657_v41 = vadd.f32 %v6867_v46, %v8434_v60  ;;  %v6869_v49 = vadd.f32 %v5478_v54, %v3109_v58 }
 0x201   : > { %v6702_v56 = vpop.f32.mrb[20].mxu1  ;;  %5691 = vst [vmem:[%s8439_s20 + $0x90] sm:$0xff] %v5659_v37  ;;  %v5660_v59 = vadd.f32 %v6868_v43, %v8434_v60 }
 0x202   : > { %v3122_v0 = vpop.f32.mrb[21].mxu1  ;;  %5689 = vst [vmem:[%s8439_s20 + $0x80] sm:$0xff] %v5657_v41  ;;  %v5658_v29 = vadd.f32 %v6869_v49, %v8434_v60 }
 0x203   : > { %v6703_v63 = vpop.f32.mrb[22].mxu1  ;;  %5692 = vst [vmem:[%s8439_s20 + $0x98] sm:$0xff] %v5660_v59 }
 0x204   : > { %v3125_v22 = vpop.f32.mrb[23].mxu1  ;;  %5690 = vst [vmem:[%s8439_s20 + $0x88] sm:$0xff] %v5658_v29  ;;  %v6838_v35 = vpop.f32.mrb[20].mxu0 }
 0x205   : > { %v6870_v40 = vadd.f32 %v6838_v35, %v6702_v56  ;;  %v5491_v8 = vpop.f32.mrb[21].mxu0 }
 0x206   : > { %v6871_v51 = vadd.f32 %v5491_v8, %v3122_v0  ;;  %v6839_v57 = vpop.f32.mrb[22].mxu0 }
 0x207   : > { %v5663_v15 = vadd.f32 %v6870_v40, %v8434_v60  ;;  %v6872_v16 = vadd.f32 %v6839_v57, %v6703_v63  ;;  %v5494_v3 = vpop.f32.mrb[23].mxu0 }
 0x208   : > { %v5661_v4 = vadd.f32 %v6871_v51, %v8434_v60  ;;  %v6873_v26 = vadd.f32 %v5494_v3, %v3125_v22 }
 0x209   : > { %v6706_v45 = vpop.f32.mrb[24].mxu1  ;;  %5695 = vst [vmem:[%s8439_s20 + $0xb0] sm:$0xff] %v5663_v15  ;;  %v5664_v53 = vadd.f32 %v6872_v16, %v8434_v60 }
 0x20a   : > { %v3138_v28 = vpop.f32.mrb[25].mxu1  ;;  %5693 = vst [vmem:[%s8439_s20 + $0xa0] sm:$0xff] %v5661_v4  ;;  %v5662_v1 = vadd.f32 %v6873_v26, %v8434_v60 }
 0x20b   : > { %v6707_v30 = vpop.f32.mrb[26].mxu1  ;;  %5696 = vst [vmem:[%s8439_s20 + $0xb8] sm:$0xff] %v5664_v53 }
 0x20c   : > { %v3141_v32 = vpop.f32.mrb[27].mxu1  ;;  %5694 = vst [vmem:[%s8439_s20 + $0xa8] sm:$0xff] %v5662_v1  ;;  %v6842_v17 = vpop.f32.mrb[24].mxu0 }
 0x20d   : > { %v6874_v34 = vadd.f32 %v6842_v17, %v6706_v45  ;;  %v5507_v36 = vpop.f32.mrb[25].mxu0 }
 0x20e   : > { %v6875_v5 = vadd.f32 %v5507_v36, %v3138_v28  ;;  %v6843_v24 = vpop.f32.mrb[26].mxu0 }
 0x20f   : > { %v5667_v27 = vadd.f32 %v6874_v34, %v8434_v60  ;;  %v6876_v9 = vadd.f32 %v6843_v24, %v6707_v30  ;;  %v5510_v20 = vpop.f32.mrb[27].mxu0 }
 0x210   : > { %v5665_v14 = vadd.f32 %v6875_v5, %v8434_v60  ;;  %v6877_v50 = vadd.f32 %v5510_v20, %v3141_v32 }
 0x211   : > { %v6710_v12 = vpop.f32.mrb[28].mxu1  ;;  %5699 = vst [vmem:[%s8439_s20 + $0xd0] sm:$0xff] %v5667_v27  ;;  %v5668_v31 = vadd.f32 %v6876_v9, %v8434_v60 }
 0x212   : > { %v3154_v2 = vpop.f32.mrb[29].mxu1  ;;  %5697 = vst [vmem:[%s8439_s20 + $0xc0] sm:$0xff] %v5665_v14  ;;  %v5666_v6 = vadd.f32 %v6877_v50, %v8434_v60 }
 0x213   : > { %v6711_v18 = vpop.f32.mrb[30].mxu1  ;;  %5700 = vst [vmem:[%s8439_s20 + $0xd8] sm:$0xff] %v5668_v31 }
 0x214   : > { %v3157_v21 = vpop.f32.mrb[31].mxu1  ;;  %5698 = vst [vmem:[%s8439_s20 + $0xc8] sm:$0xff] %v5666_v6  ;;  %v6846_v62 = vpop.f32.mrb[28].mxu0 }
 0x215   : > { %v6878_v38 = vadd.f32 %v6846_v62, %v6710_v12  ;;  %v5523_v33 = vpop.f32.mrb[29].mxu0 }
 0x216   : > { %v6879_v47 = vadd.f32 %v5523_v33, %v3154_v2  ;;  %v6847_v13 = vpop.f32.mrb[30].mxu0 }
 0x217   : > { %v5671_v61 = vadd.f32 %v6878_v38, %v8434_v60  ;;  %v6880_v44 = vadd.f32 %v6847_v13, %v6711_v18  ;;  %v5526_v52 = vpop.f32.mrb[31].mxu0 }
 0x218   : > { %v5669_v19 = vadd.f32 %v6879_v47, %v8434_v60  ;;  %v6881_v10 = vadd.f32 %v5526_v52, %v3157_v21 }
 0x219   : > { %5703 = vst [vmem:[%s8439_s20 + $0xf0] sm:$0xff] %v5671_v61  ;;  %v5672_v39 = vadd.f32 %v6880_v44, %v8434_v60 }
 0x21a   : > { %5701 = vst [vmem:[%s8439_s20 + $0xe0] sm:$0xff] %v5669_v19  ;;  %v5670_v42 = vadd.f32 %v6881_v10, %v8434_v60 }
 0x21b   : > { %5704 = vst [vmem:[%s8439_s20 + $0xf8] sm:$0xff] %v5672_v39 }
 0x21c   : > { %5702 = vst [vmem:[%s8439_s20 + $0xe8] sm:$0xff] %v5670_v42 }
 0x21d PF: > { %s13_s12 = sadd.s32 1, %s7189_s12  }
 0x21e   : > { %p10_p5 = scmp.ge.s32.totalorder %s13_s12, 4  }
 0x220   :  { %12 = sbr.rel (!%p10_p5) target bundleno = 1 (0x1), region = 72 }

</bundles_post_ra>
